<compile_context>
chip_gen: v7x
topology: tpu7x:2x2x1
jax: 0.10.0
libtpu: 0.0.40
codegen_flags: <defaults>
</compile_context>

<pallas_src>
import math
import functools

import jax
import jax.numpy as jnp
from jax.experimental import pallas as pl
from jax.experimental.pallas import tpu as pltpu

EPS = 1e-6


# ------------------------------ helpers -------------------------------------

def _tile(dim, pref):
    """Largest tile <= pref that divides dim (falls back by halving)."""
    t = min(pref, dim)
    while dim % t:
        t //= 2
    return max(t, 1)


def make_rope_tables(seq_len, head_dim, base=10000.0):
    inv_freq = 1.0 / (base ** (jnp.arange(0, head_dim, 2, dtype=jnp.float32)
                               / head_dim))
    pos = jnp.arange(seq_len, dtype=jnp.float32)
    ang = pos[:, None] * inv_freq[None, :]                          # (S, D/2)
    cos = jnp.concatenate([jnp.cos(ang), jnp.cos(ang)], axis=-1)    # (S, D)
    sin = jnp.concatenate([jnp.sin(ang), jnp.sin(ang)], axis=-1)
    return cos, sin


# ----------------------------- Pallas kernels -------------------------------

def _ln_matmul_bias_kernel(x_ref, g_ref, w_ref, b_ref, o_ref, h_ref):
    """RMSNorm(x) @ W + b.

    The RMSNorm of the (tm, H) row tile is computed only at column-tile j == 0
    and cached in the bf16 VMEM scratch `h_ref`, then reused for every column
    tile of the output.
    """
    @pl.when(pl.program_id(1) == 0)
    def _():
        x = x_ref[...].astype(jnp.float32)
        var = jnp.mean(x * x, axis=-1, keepdims=True)
        h = (x * jax.lax.rsqrt(var + EPS)) * g_ref[...].astype(jnp.float32)
        h_ref[...] = h.astype(h_ref.dtype)

    acc = jnp.dot(h_ref[...], w_ref[...], preferred_element_type=jnp.float32)
    o_ref[...] = (acc + b_ref[...].astype(jnp.float32)).astype(o_ref.dtype)


def _ln_gate_kernel(x_ref, g_ref, w1_ref, w2_ref, o_ref, h_ref):
    """RMSNorm(x) -> (h@W1) * silu(h@W2) on a (tm, tf) output tile.

    Same norm-caching scheme as `_ln_matmul_bias_kernel`.
    """
    @pl.when(pl.program_id(1) == 0)
    def _():
        x = x_ref[...].astype(jnp.float32)
        var = jnp.mean(x * x, axis=-1, keepdims=True)
        h = (x * jax.lax.rsqrt(var + EPS)) * g_ref[...].astype(jnp.float32)
        h_ref[...] = h.astype(h_ref.dtype)

    h = h_ref[...]
    a1 = jnp.dot(h, w1_ref[...], preferred_element_type=jnp.float32)
    a2 = jnp.dot(h, w2_ref[...], preferred_element_type=jnp.float32)
    o_ref[...] = (a1 * (a2 * jax.nn.sigmoid(a2))).astype(o_ref.dtype)


def _matmul_residual_kernel(x_ref, w_ref, r_ref, o_ref, acc_ref):
    """(x @ W) + residual, K-tiled with fp32 VMEM accumulator."""
    @pl.when(pl.program_id(2) == 0)
    def _():
        acc_ref[...] = jnp.zeros_like(acc_ref)

    acc_ref[...] += jnp.dot(x_ref[...], w_ref[...],
                            preferred_element_type=jnp.float32)

    @pl.when(pl.program_id(2) == pl.num_programs(2) - 1)
    def _():
        o_ref[...] = (acc_ref[...]
                      + r_ref[...].astype(jnp.float32)).astype(o_ref.dtype)


def _attn_kernel(q_ref, k_ref, v_ref, cos_ref, sin_ref, o_ref, *,
                 scale, heads, head_dim):
    """Causal RoPE attention for one (batch, head-group) tile.

    q/k/v refs: (1, S, G*D) slices of the fused QKV buffer; cos/sin: (S, D).
    """
    D = head_dim
    qb = q_ref[0].astype(jnp.float32)        # (S, G*D)
    kb = k_ref[0].astype(jnp.float32)
    vb = v_ref[0]                            # bf16
    cos = cos_ref[...]
    sin = sin_ref[...]
    S = qb.shape[0]

    row = jax.lax.broadcasted_iota(jnp.int32, (S, S), 0)
    col = jax.lax.broadcasted_iota(jnp.int32, (S, S), 1)
    causal = col <= row

    def rope(x):                             # NeoX rotate_half, fp32
        x1 = x[:, : D // 2]
        x2 = x[:, D // 2:]
        xr = jnp.concatenate([-x2, x1], axis=-1)
        return x * cos + xr * sin

    outs = []
    for g in range(heads):                   # static unroll over grouped heads
        # fold 1/sqrt(D) into q: one (S, D) multiply instead of (S, S)
        q = (rope(qb[:, g * D:(g + 1) * D]) * scale).astype(jnp.bfloat16)
        k = rope(kb[:, g * D:(g + 1) * D]).astype(jnp.bfloat16)
        v = vb[:, g * D:(g + 1) * D]
        s = jnp.dot(q, k.T, preferred_element_type=jnp.float32)
        s = jnp.where(causal, s, -1e30)      # scores stay fp32 -> safe constant
        s = s - jnp.max(s, axis=-1, keepdims=True)
        p = jnp.exp(s)
        p = p * pl.reciprocal(jnp.sum(p, axis=-1, keepdims=True), approx=True)
        outs.append(jnp.dot(p.astype(jnp.bfloat16), v,
                            preferred_element_type=jnp.float32))
    # one lane-dense (S, G*D) store
    o_ref[0] = jnp.concatenate(outs, axis=-1).astype(o_ref.dtype)


# ------------------------------ host wrappers --------------------------------

def ln_matmul_bias(x, g, w, b, *, tm_pref=256, tn_pref=256):
    T, H = x.shape
    N = w.shape[1]
    tm, tn = _tile(T, tm_pref), _tile(N, tn_pref)
    return pl.pallas_call(
        _ln_matmul_bias_kernel,
        out_shape=jax.ShapeDtypeStruct((T, N), x.dtype),
        grid=(T // tm, N // tn),
        in_specs=[pl.BlockSpec((tm, H), lambda i, j: (i, 0)),
                  pl.BlockSpec((1, H), lambda i, j: (0, 0)),
                  pl.BlockSpec((H, tn), lambda i, j: (0, j)),
                  pl.BlockSpec((1, tn), lambda i, j: (0, j))],
        out_specs=pl.BlockSpec((tm, tn), lambda i, j: (i, j)),
        scratch_shapes=[pltpu.VMEM((tm, H), jnp.bfloat16)],
        compiler_params=pltpu.CompilerParams(
            dimension_semantics=("parallel", "arbitrary")),
    )(x, g.reshape(1, H), w, b.reshape(1, N))


def ln_gate(x, g, w1, w2, *, tm_pref=256, tf_pref=256):
    T, H = x.shape
    F = w1.shape[1]
    tm, tf = _tile(T, tm_pref), _tile(F, tf_pref)
    return pl.pallas_call(
        _ln_gate_kernel,
        out_shape=jax.ShapeDtypeStruct((T, F), x.dtype),
        grid=(T // tm, F // tf),
        in_specs=[pl.BlockSpec((tm, H), lambda i, j: (i, 0)),
                  pl.BlockSpec((1, H), lambda i, j: (0, 0)),
                  pl.BlockSpec((H, tf), lambda i, j: (0, j)),
                  pl.BlockSpec((H, tf), lambda i, j: (0, j))],
        out_specs=pl.BlockSpec((tm, tf), lambda i, j: (i, j)),
        scratch_shapes=[pltpu.VMEM((tm, H), jnp.bfloat16)],
        compiler_params=pltpu.CompilerParams(
            dimension_semantics=("parallel", "arbitrary")),
    )(x, g.reshape(1, H), w1, w2)


def matmul_residual(x, w, res, *, tm_pref=256, tn_pref=256, tk_pref=512):
    T, K = x.shape
    N = w.shape[1]
    tm, tn, tk = _tile(T, tm_pref), _tile(N, tn_pref), _tile(K, tk_pref)
    return pl.pallas_call(
        _matmul_residual_kernel,
        out_shape=jax.ShapeDtypeStruct((T, N), res.dtype),
        grid=(T // tm, N // tn, K // tk),
        in_specs=[pl.BlockSpec((tm, tk), lambda i, j, k: (i, k)),
                  pl.BlockSpec((tk, tn), lambda i, j, k: (k, j)),
                  pl.BlockSpec((tm, tn), lambda i, j, k: (i, j))],
        out_specs=pl.BlockSpec((tm, tn), lambda i, j, k: (i, j)),
        scratch_shapes=[pltpu.VMEM((tm, tn), jnp.float32)],
        compiler_params=pltpu.CompilerParams(
            dimension_semantics=("parallel", "parallel", "arbitrary")),
    )(x, w, res)


def attention(qkv, cos, sin, num_heads, head_dim):
    """qkv: [B, S, 3H] bf16 (q | k | v along the last dim) -> ctx [B, S, H]."""
    B, S, threeH = qkv.shape
    D = head_dim
    H = num_heads * D
    assert threeH == 3 * H
    # pack heads so the tile's lane dim is >= 128 (lane-dense loads/stores)
    G = max(1, 128 // D)
    while num_heads % G:
        G -= 1
    GD = G * D
    n_hb = num_heads // G
    scale = 1.0 / math.sqrt(D)
    kern = functools.partial(_attn_kernel, scale=scale, heads=G, head_dim=D)
    return pl.pallas_call(
        kern,
        out_shape=jax.ShapeDtypeStruct((B, S, H), qkv.dtype),
        grid=(B, n_hb),
        in_specs=[pl.BlockSpec((1, S, GD), lambda b, h: (b, 0, h)),
                  pl.BlockSpec((1, S, GD), lambda b, h: (b, 0, h + n_hb)),
                  pl.BlockSpec((1, S, GD), lambda b, h: (b, 0, h + 2 * n_hb)),
                  pl.BlockSpec((S, D), lambda b, h: (0, 0)),
                  pl.BlockSpec((S, D), lambda b, h: (0, 0))],
        out_specs=pl.BlockSpec((1, S, GD), lambda b, h: (b, 0, h)),
        compiler_params=pltpu.CompilerParams(
            dimension_semantics=("parallel", "parallel")),
    )(qkv, qkv, qkv, cos, sin)


def qwen_block_forward(x, params, num_heads):
    """x: [B, S, H] float32 -> [B, S, H] bfloat16."""
    B, S, H = x.shape
    D = H // num_heads
    T = B * S
    x_bf = x.astype(jnp.bfloat16).reshape(T, H)

    # ln_1 fused with QKV projection (bias=True)
    qkv = ln_matmul_bias(x_bf, params["ln1_w"], params["wqkv"], params["bqkv"])
    qkv = qkv.reshape(B, S, 3 * H)                       # free reshape, no split

    # RoPE + causal attention, reading heads straight from the QKV buffer
    ctx = attention(qkv, params["rope_cos"], params["rope_sin"], num_heads, D)
    ctx2d = ctx.reshape(T, H)                            # already [B, S, H] layout

    # dense projection (bias=False) + residual
    x_attn = matmul_residual(ctx2d, params["wdense"], x_bf)

    # ln_2 fused with gated MLP up-projections, then c_proj + residual
    inter = ln_gate(x_attn, params["ln2_w"], params["w1"], params["w2"])
    y = matmul_residual(inter, params["wc"], x_attn)

    return y.reshape(B, S, H)


# ----------------------------- pure-JAX reference ----------------------------

def _ref_forward(x, params, num_heads):
    B, S, H = x.shape
    D = H // num_heads
    f32 = lambda t: t.astype(jnp.float32)

    def rms(t, w):
        var = jnp.mean(t * t, axis=-1, keepdims=True)
        return t * jax.lax.rsqrt(var + EPS) * f32(w)

    h1 = rms(x, params["ln1_w"])
    qkv = h1 @ f32(params["wqkv"]) + f32(params["bqkv"])
    q, k, v = jnp.split(qkv, 3, axis=-1)
    q = q.reshape(B, S, num_heads, D).transpose(0, 2, 1, 3)
    k = k.reshape(B, S, num_heads, D).transpose(0, 2, 1, 3)
    v = v.reshape(B, S, num_heads, D).transpose(0, 2, 1, 3)

    cos, sin = params["rope_cos"], params["rope_sin"]

    def rope(t):
        t1, t2 = t[..., : D // 2], t[..., D // 2:]
        tr = jnp.concatenate([-t2, t1], axis=-1)
        return t * cos + tr * sin

    q, k = rope(q), rope(k)
    s = jnp.einsum("bhqd,bhkd->bhqk", q, k) / math.sqrt(D)
    mask = jnp.tril(jnp.ones((S, S), bool))
    s = jnp.where(mask, s, -1e30)
    p = jax.nn.softmax(s, axis=-1)
    ctx = jnp.einsum("bhqk,bhkd->bhqd", p, v).transpose(0, 2, 1, 3).reshape(B, S, H)

    x2 = x + ctx @ f32(params["wdense"])
    h2 = rms(x2, params["ln2_w"])
    mlp = (h2 @ f32(params["w1"])) * jax.nn.silu(h2 @ f32(params["w2"]))
    return x2 + mlp @ f32(params["wc"])


# ------------------------------------ main ------------------------------------

if __name__ == "__main__":
    B, S, H, NH = 2, 16, 128, 2          # head_dim = 64, ffn = 4*H // 2 = 256
    D = H // NH
    FFN = (H * 4) // 2

    key = jax.random.PRNGKey(0)
    keys = jax.random.split(key, 9)
    scale = 0.05
    bf = lambda a: a.astype(jnp.bfloat16)

    cos, sin = make_rope_tables(S, D)    # hoisted: computed once, passed in
    params = {
        "ln1_w": bf(jax.random.normal(keys[0], (H,), jnp.float32) * 0.1 + 1.0),
        "wqkv":  bf(jax.random.normal(keys[1], (H, 3 * H), jnp.float32) * scale),
        "bqkv":  bf(jax.random.normal(keys[2], (3 * H,), jnp.float32) * scale),
        "wdense": bf(jax.random.normal(keys[3], (H, H), jnp.float32) * scale),
        "ln2_w": bf(jax.random.normal(keys[4], (H,), jnp.float32) * 0.1 + 1.0),
        "w1":    bf(jax.random.normal(keys[5], (H, FFN), jnp.float32) * scale),
        "w2":    bf(jax.random.normal(keys[6], (H, FFN), jnp.float32) * scale),
        "wc":    bf(jax.random.normal(keys[7], (FFN, H), jnp.float32) * scale),
        "rope_cos": cos,
        "rope_sin": sin,
    }
    x = jax.random.normal(keys[8], (B, S, H), jnp.float32)

    fwd = jax.jit(functools.partial(qwen_block_forward, num_heads=NH))
    out = jax.block_until_ready(fwd(x, params)).astype(jnp.float32)

    ref = jax.block_until_ready(_ref_forward(x, params, NH))
    assert out.shape == (B, S, H)
    assert jnp.allclose(out, ref, rtol=3e-2, atol=3e-2), "mismatch vs reference"

    print("KERNEL_OK")
</pallas_src>

<mosaic_0001>
module attributes {stable_mosaic.version = 11 : i64} {
  func.func @_attn_kernel(%arg0: i32, %arg1: i32, %arg2: memref<1x16x128xbf16, #tpu.memory_space<vmem>>, %arg3: memref<1x16x128xbf16, #tpu.memory_space<vmem>>, %arg4: memref<1x16x128xbf16, #tpu.memory_space<vmem>>, %arg5: memref<16x64xf32, #tpu.memory_space<vmem>>, %arg6: memref<16x64xf32, #tpu.memory_space<vmem>>, %arg7: memref<1x16x128xbf16, #tpu.memory_space<vmem>>) attributes {dimension_semantics = [#tpu.dimension_semantics<parallel>, #tpu.dimension_semantics<parallel>], iteration_bounds = array<i64: 2, 1>, scalar_prefetch = 0 : i64, scratch_operands = 0 : i64, tpu.core_type = #tpu.core_type<tc>, window_params = [{transform_indices = @transform_0, window_bounds = array<i64: 1, 16, 128>}, {transform_indices = @transform_1, window_bounds = array<i64: 1, 16, 128>}, {transform_indices = @transform_2, window_bounds = array<i64: 1, 16, 128>}, {pipeline_mode = #tpu.pipeline_mode<synchronous>, transform_indices = @transform_3, window_bounds = array<i64: 16, 64>}, {pipeline_mode = #tpu.pipeline_mode<synchronous>, transform_indices = @transform_4, window_bounds = array<i64: 16, 64>}, {transform_indices = @transform_5, window_bounds = array<i64: 1, 16, 128>}]} {
    %c0 = arith.constant 0 : index
    %c0_0 = arith.constant 0 : index
    %c0_1 = arith.constant 0 : index
    %0 = vector.load %arg2[%c0, %c0_0, %c0_1] : memref<1x16x128xbf16, #tpu.memory_space<vmem>>, vector<1x16x128xbf16>
    %1 = vector.shape_cast %0 : vector<1x16x128xbf16> to vector<16x128xbf16>
    %2 = arith.extf %1 : vector<16x128xbf16> to vector<16x128xf32>
    %c0_2 = arith.constant 0 : index
    %c0_3 = arith.constant 0 : index
    %c0_4 = arith.constant 0 : index
    %3 = vector.load %arg3[%c0_2, %c0_3, %c0_4] : memref<1x16x128xbf16, #tpu.memory_space<vmem>>, vector<1x16x128xbf16>
    %4 = vector.shape_cast %3 : vector<1x16x128xbf16> to vector<16x128xbf16>
    %5 = arith.extf %4 : vector<16x128xbf16> to vector<16x128xf32>
    %c0_5 = arith.constant 0 : index
    %c0_6 = arith.constant 0 : index
    %c0_7 = arith.constant 0 : index
    %6 = vector.load %arg4[%c0_5, %c0_6, %c0_7] : memref<1x16x128xbf16, #tpu.memory_space<vmem>>, vector<1x16x128xbf16>
    %7 = vector.shape_cast %6 : vector<1x16x128xbf16> to vector<16x128xbf16>
    %c0_8 = arith.constant 0 : index
    %c0_9 = arith.constant 0 : index
    %8 = vector.load %arg5[%c0_8, %c0_9] : memref<16x64xf32, #tpu.memory_space<vmem>>, vector<16x64xf32>
    %c0_10 = arith.constant 0 : index
    %c0_11 = arith.constant 0 : index
    %9 = vector.load %arg6[%c0_10, %c0_11] : memref<16x64xf32, #tpu.memory_space<vmem>>, vector<16x64xf32>
    %10 = tpu.iota {dimensions = array<i32: 0>} : vector<16x16xi32>
    %11 = tpu.iota {dimensions = array<i32: 1>} : vector<16x16xi32>
    %12 = arith.cmpi sle, %11, %10 : vector<16x16xi32>
    %13 = vector.extract_strided_slice %2 {offsets = [0, 0], sizes = [16, 64], strides = [1, 1]} : vector<16x128xf32> to vector<16x64xf32>
    %14 = vector.extract_strided_slice %13 {offsets = [0, 0], sizes = [16, 32], strides = [1, 1]} : vector<16x64xf32> to vector<16x32xf32>
    %15 = vector.extract_strided_slice %13 {offsets = [0, 32], sizes = [16, 32], strides = [1, 1]} : vector<16x64xf32> to vector<16x32xf32>
    %cst = arith.constant 0.000000e+00 : f32
    %16 = vector.broadcast %cst : f32 to vector<16x32xf32>
    %17 = arith.subf %16, %15 : vector<16x32xf32>
    %18 = tpu.concatenate %17, %14 in 1 : vector<16x32xf32>, vector<16x32xf32> -> vector<16x64xf32>
    %19 = arith.mulf %13, %8 : vector<16x64xf32>
    %20 = arith.mulf %18, %9 : vector<16x64xf32>
    %21 = arith.addf %19, %20 : vector<16x64xf32>
    %cst_12 = arith.constant 1.250000e-01 : f32
    %22 = vector.broadcast %cst_12 : f32 to vector<16x64xf32>
    %23 = arith.mulf %21, %22 : vector<16x64xf32>
    %24 = arith.truncf %23 : vector<16x64xf32> to vector<16x64xbf16>
    %25 = vector.extract_strided_slice %5 {offsets = [0, 0], sizes = [16, 64], strides = [1, 1]} : vector<16x128xf32> to vector<16x64xf32>
    %26 = vector.extract_strided_slice %25 {offsets = [0, 0], sizes = [16, 32], strides = [1, 1]} : vector<16x64xf32> to vector<16x32xf32>
    %27 = vector.extract_strided_slice %25 {offsets = [0, 32], sizes = [16, 32], strides = [1, 1]} : vector<16x64xf32> to vector<16x32xf32>
    %cst_13 = arith.constant 0.000000e+00 : f32
    %28 = vector.broadcast %cst_13 : f32 to vector<16x32xf32>
    %29 = arith.subf %28, %27 : vector<16x32xf32>
    %30 = tpu.concatenate %29, %26 in 1 : vector<16x32xf32>, vector<16x32xf32> -> vector<16x64xf32>
    %31 = arith.mulf %25, %8 : vector<16x64xf32>
    %32 = arith.mulf %30, %9 : vector<16x64xf32>
    %33 = arith.addf %31, %32 : vector<16x64xf32>
    %34 = arith.truncf %33 : vector<16x64xf32> to vector<16x64xbf16>
    %35 = vector.extract_strided_slice %7 {offsets = [0, 0], sizes = [16, 64], strides = [1, 1]} : vector<16x128xbf16> to vector<16x64xbf16>
    %36 = tpu.transpose %34, [1, 0] : vector<16x64xbf16> -> vector<64x16xbf16>
    %cst_14 = arith.constant dense<0.000000e+00> : vector<16x16xf32>
    %37 = tpu.matmul %24, %36, %cst_14 {dimension_numbers = #tpu.dot_dimension_numbers<[1], [0], [0], [1], [0, 0, 1, 1], [], []>} : vector<16x64xbf16>, vector<64x16xbf16>, vector<16x16xf32> -> vector<16x16xf32>
    %cst_15 = arith.constant -1.000000e+30 : f32
    %38 = vector.broadcast %cst_15 : f32 to vector<16x16xf32>
    %39 = arith.select %12, %37, %38 : vector<16x16xi1>, vector<16x16xf32>
    %cst_16 = arith.constant dense<0xFF800000> : vector<16xf32>
    %40 = vector.multi_reduction <maximumf>, %39, %cst_16 [1] : vector<16x16xf32> to vector<16xf32>
    %41 = vector.shape_cast %40 : vector<16xf32> to vector<16x1xf32>
    %42 = vector.broadcast %41 : vector<16x1xf32> to vector<16x16xf32>
    %43 = arith.subf %39, %42 : vector<16x16xf32>
    %44 = math.exp %43 : vector<16x16xf32>
    %cst_17 = arith.constant dense<0.000000e+00> : vector<16xf32>
    %45 = vector.multi_reduction <add>, %44, %cst_17 [1] : vector<16x16xf32> to vector<16xf32>
    %46 = vector.shape_cast %45 : vector<16xf32> to vector<16x1xf32>
    %47 = tpu.reciprocal %46 {approx = true} : vector<16x1xf32> -> vector<16x1xf32>
    %48 = vector.broadcast %47 : vector<16x1xf32> to vector<16x16xf32>
    %49 = arith.mulf %44, %48 : vector<16x16xf32>
    %50 = arith.truncf %49 : vector<16x16xf32> to vector<16x16xbf16>
    %cst_18 = arith.constant dense<0.000000e+00> : vector<16x64xf32>
    %51 = tpu.matmul %50, %35, %cst_18 {dimension_numbers = #tpu.dot_dimension_numbers<[1], [0], [0], [1], [0, 0, 1, 1], [], []>} : vector<16x16xbf16>, vector<16x64xbf16>, vector<16x64xf32> -> vector<16x64xf32>
    %52 = vector.extract_strided_slice %2 {offsets = [0, 64], sizes = [16, 64], strides = [1, 1]} : vector<16x128xf32> to vector<16x64xf32>
    %53 = vector.extract_strided_slice %52 {offsets = [0, 0], sizes = [16, 32], strides = [1, 1]} : vector<16x64xf32> to vector<16x32xf32>
    %54 = vector.extract_strided_slice %52 {offsets = [0, 32], sizes = [16, 32], strides = [1, 1]} : vector<16x64xf32> to vector<16x32xf32>
    %cst_19 = arith.constant 0.000000e+00 : f32
    %55 = vector.broadcast %cst_19 : f32 to vector<16x32xf32>
    %56 = arith.subf %55, %54 : vector<16x32xf32>
    %57 = tpu.concatenate %56, %53 in 1 : vector<16x32xf32>, vector<16x32xf32> -> vector<16x64xf32>
    %58 = arith.mulf %52, %8 : vector<16x64xf32>
    %59 = arith.mulf %57, %9 : vector<16x64xf32>
    %60 = arith.addf %58, %59 : vector<16x64xf32>
    %cst_20 = arith.constant 1.250000e-01 : f32
    %61 = vector.broadcast %cst_20 : f32 to vector<16x64xf32>
    %62 = arith.mulf %60, %61 : vector<16x64xf32>
    %63 = arith.truncf %62 : vector<16x64xf32> to vector<16x64xbf16>
    %64 = vector.extract_strided_slice %5 {offsets = [0, 64], sizes = [16, 64], strides = [1, 1]} : vector<16x128xf32> to vector<16x64xf32>
    %65 = vector.extract_strided_slice %64 {offsets = [0, 0], sizes = [16, 32], strides = [1, 1]} : vector<16x64xf32> to vector<16x32xf32>
    %66 = vector.extract_strided_slice %64 {offsets = [0, 32], sizes = [16, 32], strides = [1, 1]} : vector<16x64xf32> to vector<16x32xf32>
    %cst_21 = arith.constant 0.000000e+00 : f32
    %67 = vector.broadcast %cst_21 : f32 to vector<16x32xf32>
    %68 = arith.subf %67, %66 : vector<16x32xf32>
    %69 = tpu.concatenate %68, %65 in 1 : vector<16x32xf32>, vector<16x32xf32> -> vector<16x64xf32>
    %70 = arith.mulf %64, %8 : vector<16x64xf32>
    %71 = arith.mulf %69, %9 : vector<16x64xf32>
    %72 = arith.addf %70, %71 : vector<16x64xf32>
    %73 = arith.truncf %72 : vector<16x64xf32> to vector<16x64xbf16>
    %74 = vector.extract_strided_slice %7 {offsets = [0, 64], sizes = [16, 64], strides = [1, 1]} : vector<16x128xbf16> to vector<16x64xbf16>
    %75 = tpu.transpose %73, [1, 0] : vector<16x64xbf16> -> vector<64x16xbf16>
    %cst_22 = arith.constant dense<0.000000e+00> : vector<16x16xf32>
    %76 = tpu.matmul %63, %75, %cst_22 {dimension_numbers = #tpu.dot_dimension_numbers<[1], [0], [0], [1], [0, 0, 1, 1], [], []>} : vector<16x64xbf16>, vector<64x16xbf16>, vector<16x16xf32> -> vector<16x16xf32>
    %cst_23 = arith.constant -1.000000e+30 : f32
    %77 = vector.broadcast %cst_23 : f32 to vector<16x16xf32>
    %78 = arith.select %12, %76, %77 : vector<16x16xi1>, vector<16x16xf32>
    %cst_24 = arith.constant dense<0xFF800000> : vector<16xf32>
    %79 = vector.multi_reduction <maximumf>, %78, %cst_24 [1] : vector<16x16xf32> to vector<16xf32>
    %80 = vector.shape_cast %79 : vector<16xf32> to vector<16x1xf32>
    %81 = vector.broadcast %80 : vector<16x1xf32> to vector<16x16xf32>
    %82 = arith.subf %78, %81 : vector<16x16xf32>
    %83 = math.exp %82 : vector<16x16xf32>
    %cst_25 = arith.constant dense<0.000000e+00> : vector<16xf32>
    %84 = vector.multi_reduction <add>, %83, %cst_25 [1] : vector<16x16xf32> to vector<16xf32>
    %85 = vector.shape_cast %84 : vector<16xf32> to vector<16x1xf32>
    %86 = tpu.reciprocal %85 {approx = true} : vector<16x1xf32> -> vector<16x1xf32>
    %87 = vector.broadcast %86 : vector<16x1xf32> to vector<16x16xf32>
    %88 = arith.mulf %83, %87 : vector<16x16xf32>
    %89 = arith.truncf %88 : vector<16x16xf32> to vector<16x16xbf16>
    %cst_26 = arith.constant dense<0.000000e+00> : vector<16x64xf32>
    %90 = tpu.matmul %89, %74, %cst_26 {dimension_numbers = #tpu.dot_dimension_numbers<[1], [0], [0], [1], [0, 0, 1, 1], [], []>} : vector<16x16xbf16>, vector<16x64xbf16>, vector<16x64xf32> -> vector<16x64xf32>
    %91 = tpu.concatenate %51, %90 in 1 : vector<16x64xf32>, vector<16x64xf32> -> vector<16x128xf32>
    %92 = arith.truncf %91 : vector<16x128xf32> to vector<16x128xbf16>
    %c0_27 = arith.constant 0 : index
    %c0_28 = arith.constant 0 : index
    %c0_29 = arith.constant 0 : index
    %93 = vector.load %arg7[%c0_27, %c0_28, %c0_29] : memref<1x16x128xbf16, #tpu.memory_space<vmem>>, vector<1x16x128xbf16>
    %94 = vector.shape_cast %93 : vector<1x16x128xbf16> to vector<16x128xbf16>
    %95 = vector.shape_cast %92 : vector<16x128xbf16> to vector<1x16x128xbf16>
    tpu.vector_store %arg7[%c0_27, %c0_28, %c0_29], %95 {strides = array<i32>} : memref<1x16x128xbf16, #tpu.memory_space<vmem>>, vector<1x16x128xbf16>,
    return
  }
  func.func @transform_0(%arg0: i32, %arg1: i32) -> (i32, i32, i32) {
    %c0_i32 = arith.constant 0 : i32
    %c0_i32_0 = arith.constant 0 : i32
    return %arg0, %c0_i32, %arg1 : i32, i32, i32
  }
  func.func @transform_1(%arg0: i32, %arg1: i32) -> (i32, i32, i32) {
    %c1_i32 = arith.constant 1 : i32
    %0 = arith.addi %arg1, %c1_i32 : i32
    %c0_i32 = arith.constant 0 : i32
    %c0_i32_0 = arith.constant 0 : i32
    return %arg0, %c0_i32, %0 : i32, i32, i32
  }
  func.func @transform_2(%arg0: i32, %arg1: i32) -> (i32, i32, i32) {
    %c2_i32 = arith.constant 2 : i32
    %0 = arith.addi %arg1, %c2_i32 : i32
    %c0_i32 = arith.constant 0 : i32
    %c0_i32_0 = arith.constant 0 : i32
    return %arg0, %c0_i32, %0 : i32, i32, i32
  }
  func.func @transform_3(%arg0: i32, %arg1: i32) -> (i32, i32) {
    %c0_i32 = arith.constant 0 : i32
    %c0_i32_0 = arith.constant 0 : i32
    %c0_i32_1 = arith.constant 0 : i32
    return %c0_i32, %c0_i32_0 : i32, i32
  }
  func.func @transform_4(%arg0: i32, %arg1: i32) -> (i32, i32) {
    %c0_i32 = arith.constant 0 : i32
    %c0_i32_0 = arith.constant 0 : i32
    %c0_i32_1 = arith.constant 0 : i32
    return %c0_i32, %c0_i32_0 : i32, i32
  }
  func.func @transform_5(%arg0: i32, %arg1: i32) -> (i32, i32, i32) {
    %c0_i32 = arith.constant 0 : i32
    %c0_i32_0 = arith.constant 0 : i32
    return %arg0, %c0_i32, %arg1 : i32, i32, i32
  }
}

module attributes {stable_mosaic.version = 11 : i64} {
  func.func @_ln_matmul_bias_kernel(%arg0: i32, %arg1: i32, %arg2: memref<32x128xbf16, #tpu.memory_space<vmem>>, %arg3: memref<1x128xbf16, #tpu.memory_space<vmem>>, %arg4: memref<128x128xbf16, #tpu.memory_space<vmem>>, %arg5: memref<1x128xbf16, #tpu.memory_space<vmem>>, %arg6: memref<32x128xbf16, #tpu.memory_space<vmem>>, %arg7: memref<32x128xbf16, #tpu.memory_space<vmem>>) attributes {dimension_semantics = [#tpu.dimension_semantics<parallel>, #tpu.dimension_semantics<arbitrary>], iteration_bounds = array<i64: 1, 3>, scalar_prefetch = 0 : i64, scratch_operands = 1 : i64, tpu.core_type = #tpu.core_type<tc>, window_params = [{transform_indices = @transform_0, window_bounds = array<i64: 32, 128>}, {pipeline_mode = #tpu.pipeline_mode<synchronous>, transform_indices = @transform_1, window_bounds = array<i64: 1, 128>}, {transform_indices = @transform_2, window_bounds = array<i64: 128, 128>}, {transform_indices = @transform_3, window_bounds = array<i64: 1, 128>}, {transform_indices = @transform_4, window_bounds = array<i64: 32, 128>}]} {
    %c0_i32 = arith.constant 0 : i32
    %0 = arith.cmpi eq, %arg1, %c0_i32 : i32
    %1 = arith.extui %0 : i1 to i32
    %c0_i32_0 = arith.constant 0 : i32
    %2 = arith.cmpi ne, %1, %c0_i32_0 : i32
    scf.if %2 {
      %c0_8 = arith.constant 0 : index
      %c0_9 = arith.constant 0 : index
      %12 = vector.load %arg2[%c0_8, %c0_9] : memref<32x128xbf16, #tpu.memory_space<vmem>>, vector<32x128xbf16>
      %13 = arith.extf %12 : vector<32x128xbf16> to vector<32x128xf32>
      %14 = arith.mulf %13, %13 : vector<32x128xf32>
      %cst_10 = arith.constant dense<0.000000e+00> : vector<32xf32>
      %15 = vector.multi_reduction <add>, %14, %cst_10 [1] : vector<32x128xf32> to vector<32xf32>
      %16 = vector.shape_cast %15 : vector<32xf32> to vector<32x1xf32>
      %cst_11 = arith.constant 1.280000e+02 : f32
      %17 = vector.broadcast %cst_11 : f32 to vector<32x1xf32>
      %18 = arith.divf %16, %17 : vector<32x1xf32>
      %cst_12 = arith.constant 9.99999997E-7 : f32
      %19 = vector.broadcast %cst_12 : f32 to vector<32x1xf32>
      %20 = arith.addf %18, %19 : vector<32x1xf32>
      %21 = math.rsqrt %20 : vector<32x1xf32>
      %22 = vector.broadcast %21 : vector<32x1xf32> to vector<32x128xf32>
      %23 = arith.mulf %13, %22 : vector<32x128xf32>
      %c0_13 = arith.constant 0 : index
      %c0_14 = arith.constant 0 : index
      %24 = vector.load %arg3[%c0_13, %c0_14] : memref<1x128xbf16, #tpu.memory_space<vmem>>, vector<1x128xbf16>
      %25 = arith.extf %24 : vector<1x128xbf16> to vector<1x128xf32>
      %26 = vector.broadcast %25 : vector<1x128xf32> to vector<32x128xf32>
      %27 = arith.mulf %23, %26 : vector<32x128xf32>
      %28 = arith.truncf %27 : vector<32x128xf32> to vector<32x128xbf16>
      %c0_15 = arith.constant 0 : index
      %c0_16 = arith.constant 0 : index
      %29 = vector.load %arg7[%c0_15, %c0_16] : memref<32x128xbf16, #tpu.memory_space<vmem>>, vector<32x128xbf16>
      tpu.vector_store %arg7[%c0_15, %c0_16], %28 {strides = array<i32>} : memref<32x128xbf16, #tpu.memory_space<vmem>>, vector<32x128xbf16>,
    } else {
    }
    %c0 = arith.constant 0 : index
    %c0_1 = arith.constant 0 : index
    %3 = vector.load %arg7[%c0, %c0_1] : memref<32x128xbf16, #tpu.memory_space<vmem>>, vector<32x128xbf16>
    %c0_2 = arith.constant 0 : index
    %c0_3 = arith.constant 0 : index
    %4 = vector.load %arg4[%c0_2, %c0_3] : memref<128x128xbf16, #tpu.memory_space<vmem>>, vector<128x128xbf16>
    %cst = arith.constant dense<0.000000e+00> : vector<32x128xf32>
    %5 = tpu.matmul %3, %4, %cst {dimension_numbers = #tpu.dot_dimension_numbers<[1], [0], [0], [1], [0, 0, 1, 1], [], []>} : vector<32x128xbf16>, vector<128x128xbf16>, vector<32x128xf32> -> vector<32x128xf32>
    %c0_4 = arith.constant 0 : index
    %c0_5 = arith.constant 0 : index
    %6 = vector.load %arg5[%c0_4, %c0_5] : memref<1x128xbf16, #tpu.memory_space<vmem>>, vector<1x128xbf16>
    %7 = arith.extf %6 : vector<1x128xbf16> to vector<1x128xf32>
    %8 = vector.broadcast %7 : vector<1x128xf32> to vector<32x128xf32>
    %9 = arith.addf %5, %8 : vector<32x128xf32>
    %10 = arith.truncf %9 : vector<32x128xf32> to vector<32x128xbf16>
    %c0_6 = arith.constant 0 : index
    %c0_7 = arith.constant 0 : index
    %11 = vector.load %arg6[%c0_6, %c0_7] : memref<32x128xbf16, #tpu.memory_space<vmem>>, vector<32x128xbf16>
    tpu.vector_store %arg6[%c0_6, %c0_7], %10 {strides = array<i32>} : memref<32x128xbf16, #tpu.memory_space<vmem>>, vector<32x128xbf16>,
    return
  }
  func.func @transform_0(%arg0: i32, %arg1: i32) -> (i32, i32) {
    %c0_i32 = arith.constant 0 : i32
    %c0_i32_0 = arith.constant 0 : i32
    return %arg0, %c0_i32 : i32, i32
  }
  func.func @transform_1(%arg0: i32, %arg1: i32) -> (i32, i32) {
    %c0_i32 = arith.constant 0 : i32
    %c0_i32_0 = arith.constant 0 : i32
    %c0_i32_1 = arith.constant 0 : i32
    return %c0_i32, %c0_i32_0 : i32, i32
  }
  func.func @transform_2(%arg0: i32, %arg1: i32) -> (i32, i32) {
    %c0_i32 = arith.constant 0 : i32
    %c0_i32_0 = arith.constant 0 : i32
    return %c0_i32, %arg1 : i32, i32
  }
  func.func @transform_3(%arg0: i32, %arg1: i32) -> (i32, i32) {
    %c0_i32 = arith.constant 0 : i32
    %c0_i32_0 = arith.constant 0 : i32
    return %c0_i32, %arg1 : i32, i32
  }
  func.func @transform_4(%arg0: i32, %arg1: i32) -> (i32, i32) {
    %c0_i32 = arith.constant 0 : i32
    return %arg0, %arg1 : i32, i32
  }
}

module attributes {stable_mosaic.version = 11 : i64} {
  func.func @_ln_gate_kernel(%arg0: i32, %arg1: i32, %arg2: memref<32x128xbf16, #tpu.memory_space<vmem>>, %arg3: memref<1x128xbf16, #tpu.memory_space<vmem>>, %arg4: memref<128x256xbf16, #tpu.memory_space<vmem>>, %arg5: memref<128x256xbf16, #tpu.memory_space<vmem>>, %arg6: memref<32x256xbf16, #tpu.memory_space<vmem>>, %arg7: memref<32x128xbf16, #tpu.memory_space<vmem>>) attributes {dimension_semantics = [#tpu.dimension_semantics<parallel>, #tpu.dimension_semantics<arbitrary>], iteration_bounds = array<i64: 1, 1>, scalar_prefetch = 0 : i64, scratch_operands = 1 : i64, tpu.core_type = #tpu.core_type<tc>, window_params = [{transform_indices = @transform_0, window_bounds = array<i64: 32, 128>}, {pipeline_mode = #tpu.pipeline_mode<synchronous>, transform_indices = @transform_1, window_bounds = array<i64: 1, 128>}, {transform_indices = @transform_2, window_bounds = array<i64: 128, 256>}, {transform_indices = @transform_3, window_bounds = array<i64: 128, 256>}, {transform_indices = @transform_4, window_bounds = array<i64: 32, 256>}]} {
    %c0_i32 = arith.constant 0 : i32
    %0 = arith.cmpi eq, %arg1, %c0_i32 : i32
    %1 = arith.extui %0 : i1 to i32
    %c0_i32_0 = arith.constant 0 : i32
    %2 = arith.cmpi ne, %1, %c0_i32_0 : i32
    scf.if %2 {
      %c0_10 = arith.constant 0 : index
      %c0_11 = arith.constant 0 : index
      %17 = vector.load %arg2[%c0_10, %c0_11] : memref<32x128xbf16, #tpu.memory_space<vmem>>, vector<32x128xbf16>
      %18 = arith.extf %17 : vector<32x128xbf16> to vector<32x128xf32>
      %19 = arith.mulf %18, %18 : vector<32x128xf32>
      %cst_12 = arith.constant dense<0.000000e+00> : vector<32xf32>
      %20 = vector.multi_reduction <add>, %19, %cst_12 [1] : vector<32x128xf32> to vector<32xf32>
      %21 = vector.shape_cast %20 : vector<32xf32> to vector<32x1xf32>
      %cst_13 = arith.constant 1.280000e+02 : f32
      %22 = vector.broadcast %cst_13 : f32 to vector<32x1xf32>
      %23 = arith.divf %21, %22 : vector<32x1xf32>
      %cst_14 = arith.constant 9.99999997E-7 : f32
      %24 = vector.broadcast %cst_14 : f32 to vector<32x1xf32>
      %25 = arith.addf %23, %24 : vector<32x1xf32>
      %26 = math.rsqrt %25 : vector<32x1xf32>
      %27 = vector.broadcast %26 : vector<32x1xf32> to vector<32x128xf32>
      %28 = arith.mulf %18, %27 : vector<32x128xf32>
      %c0_15 = arith.constant 0 : index
      %c0_16 = arith.constant 0 : index
      %29 = vector.load %arg3[%c0_15, %c0_16] : memref<1x128xbf16, #tpu.memory_space<vmem>>, vector<1x128xbf16>
      %30 = arith.extf %29 : vector<1x128xbf16> to vector<1x128xf32>
      %31 = vector.broadcast %30 : vector<1x128xf32> to vector<32x128xf32>
      %32 = arith.mulf %28, %31 : vector<32x128xf32>
      %33 = arith.truncf %32 : vector<32x128xf32> to vector<32x128xbf16>
      %c0_17 = arith.constant 0 : index
      %c0_18 = arith.constant 0 : index
      %34 = vector.load %arg7[%c0_17, %c0_18] : memref<32x128xbf16, #tpu.memory_space<vmem>>, vector<32x128xbf16>
      tpu.vector_store %arg7[%c0_17, %c0_18], %33 {strides = array<i32>} : memref<32x128xbf16, #tpu.memory_space<vmem>>, vector<32x128xbf16>,
    } else {
    }
    %c0 = arith.constant 0 : index
    %c0_1 = arith.constant 0 : index
    %3 = vector.load %arg7[%c0, %c0_1] : memref<32x128xbf16, #tpu.memory_space<vmem>>, vector<32x128xbf16>
    %c0_2 = arith.constant 0 : index
    %c0_3 = arith.constant 0 : index
    %4 = vector.load %arg4[%c0_2, %c0_3] : memref<128x256xbf16, #tpu.memory_space<vmem>>, vector<128x256xbf16>
    %cst = arith.constant dense<0.000000e+00> : vector<32x256xf32>
    %5 = tpu.matmul %3, %4, %cst {dimension_numbers = #tpu.dot_dimension_numbers<[1], [0], [0], [1], [0, 0, 1, 1], [], []>} : vector<32x128xbf16>, vector<128x256xbf16>, vector<32x256xf32> -> vector<32x256xf32>
    %c0_4 = arith.constant 0 : index
    %c0_5 = arith.constant 0 : index
    %6 = vector.load %arg5[%c0_4, %c0_5] : memref<128x256xbf16, #tpu.memory_space<vmem>>, vector<128x256xbf16>
    %cst_6 = arith.constant dense<0.000000e+00> : vector<32x256xf32>
    %7 = tpu.matmul %3, %6, %cst_6 {dimension_numbers = #tpu.dot_dimension_numbers<[1], [0], [0], [1], [0, 0, 1, 1], [], []>} : vector<32x128xbf16>, vector<128x256xbf16>, vector<32x256xf32> -> vector<32x256xf32>
    %8 = arith.negf %7 : vector<32x256xf32>
    %9 = math.exp %8 : vector<32x256xf32>
    %cst_7 = arith.constant 1.000000e+00 : f32
    %10 = vector.broadcast %cst_7 : f32 to vector<32x256xf32>
    %11 = arith.addf %10, %9 : vector<32x256xf32>
    %12 = arith.divf %10, %11 : vector<32x256xf32>
    %13 = arith.mulf %7, %12 : vector<32x256xf32>
    %14 = arith.mulf %5, %13 : vector<32x256xf32>
    %15 = arith.truncf %14 : vector<32x256xf32> to vector<32x256xbf16>
    %c0_8 = arith.constant 0 : index
    %c0_9 = arith.constant 0 : index
    %16 = vector.load %arg6[%c0_8, %c0_9] : memref<32x256xbf16, #tpu.memory_space<vmem>>, vector<32x256xbf16>
    tpu.vector_store %arg6[%c0_8, %c0_9], %15 {strides = array<i32>} : memref<32x256xbf16, #tpu.memory_space<vmem>>, vector<32x256xbf16>,
    return
  }
  func.func @transform_0(%arg0: i32, %arg1: i32) -> (i32, i32) {
    %c0_i32 = arith.constant 0 : i32
    %c0_i32_0 = arith.constant 0 : i32
    return %arg0, %c0_i32 : i32, i32
  }
  func.func @transform_1(%arg0: i32, %arg1: i32) -> (i32, i32) {
    %c0_i32 = arith.constant 0 : i32
    %c0_i32_0 = arith.constant 0 : i32
    %c0_i32_1 = arith.constant 0 : i32
    return %c0_i32, %c0_i32_0 : i32, i32
  }
  func.func @transform_2(%arg0: i32, %arg1: i32) -> (i32, i32) {
    %c0_i32 = arith.constant 0 : i32
    %c0_i32_0 = arith.constant 0 : i32
    return %c0_i32, %arg1 : i32, i32
  }
  func.func @transform_3(%arg0: i32, %arg1: i32) -> (i32, i32) {
    %c0_i32 = arith.constant 0 : i32
    %c0_i32_0 = arith.constant 0 : i32
    return %c0_i32, %arg1 : i32, i32
  }
  func.func @transform_4(%arg0: i32, %arg1: i32) -> (i32, i32) {
    %c0_i32 = arith.constant 0 : i32
    return %arg0, %arg1 : i32, i32
  }
}

module attributes {stable_mosaic.version = 11 : i64} {
  func.func @_matmul_residual_kernel(%arg0: i32, %arg1: i32, %arg2: i32, %arg3: memref<32x128xbf16, #tpu.memory_space<vmem>>, %arg4: memref<128x128xbf16, #tpu.memory_space<vmem>>, %arg5: memref<32x128xbf16, #tpu.memory_space<vmem>>, %arg6: memref<32x128xbf16, #tpu.memory_space<vmem>>, %arg7: memref<32x128xf32, #tpu.memory_space<vmem>>) attributes {dimension_semantics = [#tpu.dimension_semantics<parallel>, #tpu.dimension_semantics<parallel>, #tpu.dimension_semantics<arbitrary>], iteration_bounds = array<i64: 1, 1, 1>, scalar_prefetch = 0 : i64, scratch_operands = 1 : i64, tpu.core_type = #tpu.core_type<tc>, window_params = [{transform_indices = @transform_0, window_bounds = array<i64: 32, 128>}, {transform_indices = @transform_1, window_bounds = array<i64: 128, 128>}, {transform_indices = @transform_2, window_bounds = array<i64: 32, 128>}, {transform_indices = @transform_3, window_bounds = array<i64: 32, 128>}]} {
    %c0_i32 = arith.constant 0 : i32
    %0 = arith.cmpi eq, %arg2, %c0_i32 : i32
    %1 = arith.extui %0 : i1 to i32
    %c0_i32_0 = arith.constant 0 : i32
    %2 = arith.cmpi ne, %1, %c0_i32_0 : i32
    scf.if %2 {
      %cst_10 = arith.constant 0.000000e+00 : f32
      %12 = vector.broadcast %cst_10 : f32 to vector<32x128xf32>
      %c0_11 = arith.constant 0 : index
      %c0_12 = arith.constant 0 : index
      %13 = vector.load %arg7[%c0_11, %c0_12] : memref<32x128xf32, #tpu.memory_space<vmem>>, vector<32x128xf32>
      tpu.vector_store %arg7[%c0_11, %c0_12], %12 {strides = array<i32>} : memref<32x128xf32, #tpu.memory_space<vmem>>, vector<32x128xf32>,
    } else {
    }
    %c0 = arith.constant 0 : index
    %c0_1 = arith.constant 0 : index
    %3 = vector.load %arg7[%c0, %c0_1] : memref<32x128xf32, #tpu.memory_space<vmem>>, vector<32x128xf32>
    %c0_2 = arith.constant 0 : index
    %c0_3 = arith.constant 0 : index
    %4 = vector.load %arg3[%c0_2, %c0_3] : memref<32x128xbf16, #tpu.memory_space<vmem>>, vector<32x128xbf16>
    %c0_4 = arith.constant 0 : index
    %c0_5 = arith.constant 0 : index
    %5 = vector.load %arg4[%c0_4, %c0_5] : memref<128x128xbf16, #tpu.memory_space<vmem>>, vector<128x128xbf16>
    %cst = arith.constant dense<0.000000e+00> : vector<32x128xf32>
    %6 = tpu.matmul %4, %5, %cst {dimension_numbers = #tpu.dot_dimension_numbers<[1], [0], [0], [1], [0, 0, 1, 1], [], []>} : vector<32x128xbf16>, vector<128x128xbf16>, vector<32x128xf32> -> vector<32x128xf32>
    %7 = arith.addf %3, %6 : vector<32x128xf32>
    %c0_6 = arith.constant 0 : index
    %c0_7 = arith.constant 0 : index
    %8 = vector.load %arg7[%c0_6, %c0_7] : memref<32x128xf32, #tpu.memory_space<vmem>>, vector<32x128xf32>
    tpu.vector_store %arg7[%c0_6, %c0_7], %7 {strides = array<i32>} : memref<32x128xf32, #tpu.memory_space<vmem>>, vector<32x128xf32>,
    %c0_i32_8 = arith.constant 0 : i32
    %9 = arith.cmpi eq, %arg2, %c0_i32_8 : i32
    %10 = arith.extui %9 : i1 to i32
    %c0_i32_9 = arith.constant 0 : i32
    %11 = arith.cmpi ne, %10, %c0_i32_9 : i32
    scf.if %11 {
      %c0_10 = arith.constant 0 : index
      %c0_11 = arith.constant 0 : index
      %12 = vector.load %arg7[%c0_10, %c0_11] : memref<32x128xf32, #tpu.memory_space<vmem>>, vector<32x128xf32>
      %c0_12 = arith.constant 0 : index
      %c0_13 = arith.constant 0 : index
      %13 = vector.load %arg5[%c0_12, %c0_13] : memref<32x128xbf16, #tpu.memory_space<vmem>>, vector<32x128xbf16>
      %14 = arith.extf %13 : vector<32x128xbf16> to vector<32x128xf32>
      %15 = arith.addf %12, %14 : vector<32x128xf32>
      %16 = arith.truncf %15 : vector<32x128xf32> to vector<32x128xbf16>
      %c0_14 = arith.constant 0 : index
      %c0_15 = arith.constant 0 : index
      %17 = vector.load %arg6[%c0_14, %c0_15] : memref<32x128xbf16, #tpu.memory_space<vmem>>, vector<32x128xbf16>
      tpu.vector_store %arg6[%c0_14, %c0_15], %16 {strides = array<i32>} : memref<32x128xbf16, #tpu.memory_space<vmem>>, vector<32x128xbf16>,
    } else {
    }
    return
  }
  func.func @transform_0(%arg0: i32, %arg1: i32, %arg2: i32) -> (i32, i32) {
    %c0_i32 = arith.constant 0 : i32
    return %arg0, %arg2 : i32, i32
  }
  func.func @transform_1(%arg0: i32, %arg1: i32, %arg2: i32) -> (i32, i32) {
    %c0_i32 = arith.constant 0 : i32
    return %arg2, %arg1 : i32, i32
  }
  func.func @transform_2(%arg0: i32, %arg1: i32, %arg2: i32) -> (i32, i32) {
    %c0_i32 = arith.constant 0 : i32
    return %arg0, %arg1 : i32, i32
  }
  func.func @transform_3(%arg0: i32, %arg1: i32, %arg2: i32) -> (i32, i32) {
    %c0_i32 = arith.constant 0 : i32
    return %arg0, %arg1 : i32, i32
  }
}

module attributes {stable_mosaic.version = 11 : i64} {
  func.func @_matmul_residual_kernel(%arg0: i32, %arg1: i32, %arg2: i32, %arg3: memref<32x256xbf16, #tpu.memory_space<vmem>>, %arg4: memref<256x128xbf16, #tpu.memory_space<vmem>>, %arg5: memref<32x128xbf16, #tpu.memory_space<vmem>>, %arg6: memref<32x128xbf16, #tpu.memory_space<vmem>>, %arg7: memref<32x128xf32, #tpu.memory_space<vmem>>) attributes {dimension_semantics = [#tpu.dimension_semantics<parallel>, #tpu.dimension_semantics<parallel>, #tpu.dimension_semantics<arbitrary>], iteration_bounds = array<i64: 1, 1, 1>, scalar_prefetch = 0 : i64, scratch_operands = 1 : i64, tpu.core_type = #tpu.core_type<tc>, window_params = [{transform_indices = @transform_0, window_bounds = array<i64: 32, 256>}, {transform_indices = @transform_1, window_bounds = array<i64: 256, 128>}, {transform_indices = @transform_2, window_bounds = array<i64: 32, 128>}, {transform_indices = @transform_3, window_bounds = array<i64: 32, 128>}]} {
    %c0_i32 = arith.constant 0 : i32
    %0 = arith.cmpi eq, %arg2, %c0_i32 : i32
    %1 = arith.extui %0 : i1 to i32
    %c0_i32_0 = arith.constant 0 : i32
    %2 = arith.cmpi ne, %1, %c0_i32_0 : i32
    scf.if %2 {
      %cst_10 = arith.constant 0.000000e+00 : f32
      %12 = vector.broadcast %cst_10 : f32 to vector<32x128xf32>
      %c0_11 = arith.constant 0 : index
      %c0_12 = arith.constant 0 : index
      %13 = vector.load %arg7[%c0_11, %c0_12] : memref<32x128xf32, #tpu.memory_space<vmem>>, vector<32x128xf32>
      tpu.vector_store %arg7[%c0_11, %c0_12], %12 {strides = array<i32>} : memref<32x128xf32, #tpu.memory_space<vmem>>, vector<32x128xf32>,
    } else {
    }
    %c0 = arith.constant 0 : index
    %c0_1 = arith.constant 0 : index
    %3 = vector.load %arg7[%c0, %c0_1] : memref<32x128xf32, #tpu.memory_space<vmem>>, vector<32x128xf32>
    %c0_2 = arith.constant 0 : index
    %c0_3 = arith.constant 0 : index
    %4 = vector.load %arg3[%c0_2, %c0_3] : memref<32x256xbf16, #tpu.memory_space<vmem>>, vector<32x256xbf16>
    %c0_4 = arith.constant 0 : index
    %c0_5 = arith.constant 0 : index
    %5 = vector.load %arg4[%c0_4, %c0_5] : memref<256x128xbf16, #tpu.memory_space<vmem>>, vector<256x128xbf16>
    %cst = arith.constant dense<0.000000e+00> : vector<32x128xf32>
    %6 = tpu.matmul %4, %5, %cst {dimension_numbers = #tpu.dot_dimension_numbers<[1], [0], [0], [1], [0, 0, 1, 1], [], []>} : vector<32x256xbf16>, vector<256x128xbf16>, vector<32x128xf32> -> vector<32x128xf32>
    %7 = arith.addf %3, %6 : vector<32x128xf32>
    %c0_6 = arith.constant 0 : index
    %c0_7 = arith.constant 0 : index
    %8 = vector.load %arg7[%c0_6, %c0_7] : memref<32x128xf32, #tpu.memory_space<vmem>>, vector<32x128xf32>
    tpu.vector_store %arg7[%c0_6, %c0_7], %7 {strides = array<i32>} : memref<32x128xf32, #tpu.memory_space<vmem>>, vector<32x128xf32>,
    %c0_i32_8 = arith.constant 0 : i32
    %9 = arith.cmpi eq, %arg2, %c0_i32_8 : i32
    %10 = arith.extui %9 : i1 to i32
    %c0_i32_9 = arith.constant 0 : i32
    %11 = arith.cmpi ne, %10, %c0_i32_9 : i32
    scf.if %11 {
      %c0_10 = arith.constant 0 : index
      %c0_11 = arith.constant 0 : index
      %12 = vector.load %arg7[%c0_10, %c0_11] : memref<32x128xf32, #tpu.memory_space<vmem>>, vector<32x128xf32>
      %c0_12 = arith.constant 0 : index
      %c0_13 = arith.constant 0 : index
      %13 = vector.load %arg5[%c0_12, %c0_13] : memref<32x128xbf16, #tpu.memory_space<vmem>>, vector<32x128xbf16>
      %14 = arith.extf %13 : vector<32x128xbf16> to vector<32x128xf32>
      %15 = arith.addf %12, %14 : vector<32x128xf32>
      %16 = arith.truncf %15 : vector<32x128xf32> to vector<32x128xbf16>
      %c0_14 = arith.constant 0 : index
      %c0_15 = arith.constant 0 : index
      %17 = vector.load %arg6[%c0_14, %c0_15] : memref<32x128xbf16, #tpu.memory_space<vmem>>, vector<32x128xbf16>
      tpu.vector_store %arg6[%c0_14, %c0_15], %16 {strides = array<i32>} : memref<32x128xbf16, #tpu.memory_space<vmem>>, vector<32x128xbf16>,
    } else {
    }
    return
  }
  func.func @transform_0(%arg0: i32, %arg1: i32, %arg2: i32) -> (i32, i32) {
    %c0_i32 = arith.constant 0 : i32
    return %arg0, %arg2 : i32, i32
  }
  func.func @transform_1(%arg0: i32, %arg1: i32, %arg2: i32) -> (i32, i32) {
    %c0_i32 = arith.constant 0 : i32
    return %arg2, %arg1 : i32, i32
  }
  func.func @transform_2(%arg0: i32, %arg1: i32, %arg2: i32) -> (i32, i32) {
    %c0_i32 = arith.constant 0 : i32
    return %arg0, %arg1 : i32, i32
  }
  func.func @transform_3(%arg0: i32, %arg1: i32, %arg2: i32) -> (i32, i32) {
    %c0_i32 = arith.constant 0 : i32
    return %arg0, %arg1 : i32, i32
  }
}

</mosaic_0001>

<bundles_post_ra>
// kernel: qwen_block_forward.5
= control target key start
LH: loop header
LB: loop body
LE: loop exit
PB: predicated region body
PF: predicated region fallthrough
CT: control target
= control target key end

     0   :  { %9 = vsyncpa [#allocation4], 0  ;;  %s1056_s0 = inlined_call_operand.vmem [shape: bf16[32,128], index: 0, kind: input, shape index: {}]   ;;  %s1057_s1 = inlined_call_operand.vmem [shape: bf16[1,128], index: 1, kind: input, shape index: {}]   ;;  %s1058_s2 = inlined_call_operand.hbm [shape: bf16[128,384], index: 2, kind: input, shape index: {}]   ;;  %s1059_s3 = inlined_call_operand.vmem [shape: bf16[1,384], index: 3, kind: input, shape index: {}]   ;;  %s1060_s4 = inlined_call_operand.vmem [shape: bf16[32,384], index: 4, kind: output, shape index: {}]  }
   0x1   :  { %11 = vsyncpa [#allocation4 + $0x1], 0  ;;  %s884_s15 = smov 0   ;;  %s886_s16 = smov 0  }
   0x2   :  { %s888_s17 = smov 0   ;;  %s890_s18 = smov 0  }
   0x3   :  { %s892_s19 = smov 0   ;;  %s894_s20 = smov 0  }
   0x4 LB: > { %s618_s21 = sadd.s32 4294967295, %s853_s20   ;;  %s26_s22 = sadd.s32 1, %s849_s19  ;;  %s853_s20 = sphi %s894_s20, %s17_s20   ;;  %s849_s19 = sphi %s892_s19, %s1071_s19   ;;  %s845_s18 = sphi %s890_s18, %s1070_s18   ;;  %s841_s17 = sphi %s888_s17, %s1069_s17   ;;  %s837_s16 = sphi %s886_s16, %s1068_s16   ;;  %s833_s15 = sphi %s884_s15, %s1067_s15  }
   0x5   : > { %p27_p0 = scmp.ge.s32.totalorder %s26_s22, 3  ;;  %s83_s23 = sadd.s32 1, %s841_s17 }
   0x6   : > { %p90_p1 = scmp.ne.s32.totalorder %s841_s17, %s837_s16  ;;  %p91_p2 = scmp.eq.s32.totalorder %s853_s20, 0 }
   0x7   : > { %s1073_s22 = smov (%p27_p0, %s26_s22), 0  ;;  %p96_p4 = scmp.ne.s32.totalorder %s837_s16, %s833_s15 }
   0x8   : > { %p920_p3 = por %p91_p2, %p90_p1  ;;  %s80_s25 = ssub.s32 %s849_s19, %s1073_s22 }
   0x9   : > { %p97_p5 = scmp.eq.s32.totalorder %s618_s21, 0  ;;  %p81_p6 = scmp.eq.s32.totalorder %s80_s25, 0 }
   0xa   : > { %p148_p7 = scmp.eq.s32.totalorder %s618_s21, 2  ;;  %p705_p10 = scmp.lt.s32.totalorder %s853_s20, 3 }
   0xb   : > { %p927_p8 = por %p97_p5, %p96_p4  ;;  %s186_s29 = sand.u32 1, %s841_s17  }
   0xc   : > { %s932_s27 = scalar_select %p81_p6, %s841_s17, %s83_s23  }
   0xd   : > { %p934_p9 = por %p148_p7, %p90_p1  ;;  %s624_s30 = sshll.u32 %s849_s19, 6 }
   0xe   : > { %s623_s5 = sshll.u32 %s186_s29, 6  ;;  %s944_s8 = scalar_lea.hbm %s1058_s2, %s624_s30 }
   0xf   : > { %s1063_s28 = scalar_select %p934_p9, 1, 0 }
  0x10   : > { %s190_s9 = scalar_lea.vmem [#allocation3], %s623_s5  ;;  %p948_p11 = pnand %p705_p10, %p920_p3 }
  0x11   : > { %s196_s10 = sshll.u32 %s190_s9, 4  ;;  %s955_s12 = scalar_lea.sflag [#allocation4], %s186_s29  ;;  %s952_s10 = int_to_ptr.vmem [resolvable:$true] %s196_s10 }
  0x12   : > { %s773_s13 = scalar_lea.hbm %s944_s8, 1024  ;;  %p775_p0 = pneg %p948_p11 }
  0x13   : > { %p774_p13 = scmp.ne.s32.totalorder %s944_s8, %s773_s13  ;;  %s778_s21 = scalar_lea.hbm %s1058_s2, 3072 }
  0x14   : > { %p779_p3 = scmp.lt.u32.totalorder %s944_s8, %s1058_s2  ;;  %p780_p4 = scmp.lt.u32.totalorder %s778_s21, %s773_s13 }
  0x15   : > { %p776_p1 = pnand %p775_p0, %p774_p13  ;;  %p782_p6 = scmp.lt.u32.totalorder %s773_s13, %s944_s8 }
  0x16   : > { %p781_p5 = por %p780_p4, %p779_p3 }
  0x17   : > { %p777_p2 = pneg %p776_p1 }
  0x18   : > { %p783_p7 = por %p782_p6, %p781_p5 }
  0x1a   : > { %p784_p10 = pnand %p783_p7, %p777_p2 }
  0x1c   : > { %787 = shalt.err (!%p784_p10)
}
  0x1d   : > { %s788_s25 = scalar_lea.vmem %s952_s10, 1024  ;;  %s855_s29 = smov [#allocation3]  }
  0x1e   : > { %p789_p13 = scmp.ne.s32.totalorder %s952_s10, %s788_s25  ;;  %s793_s30 = sshll.u32 %s855_s29, 4  ;;  %s794_s30 = int_to_ptr.vmem [resolvable:$false] %s793_s30 }
  0x1f   : > { %s795_s5 = scalar_lea.vmem %s794_s30, 2048  ;;  %p796_p9 = scmp.lt.s32.totalorder %s952_s10, %s794_s30 }
  0x20   : > { %p791_p1 = pnand %p789_p13, %p775_p0  ;;  %p797_p3 = scmp.lt.s32.totalorder %s795_s5, %s788_s25 }
  0x22   : > { %p792_p12 = pneg %p791_p1  ;;  %p798_p4 = por %p797_p3, %p796_p9 }
  0x24   : > { %p799_p5 = pnand %p798_p4, %p792_p12 }
  0x26   : > { %802 = shalt.err (!%p799_p5)
}
  0x27   : > { %s856_s6 = smov 192   ;;  %s857_s7 = smov 64  }
  0x28   : > { %s858_s9 = smov 4   ;;  %p210_p0 = scmp.lt.s32.totalorder %s853_s20, 4 }
  0x29   : > { %704 = dma.hbm_to_vmem [thread:$0]  (!%p948_p11), %s944_s8, 1024, %s952_s10, %s955_s12, %s856_s6, %s857_s7, %s858_s9  }
  0x2a   : > { %p1065_p2 = scmp.ge.s32.totalorder %s853_s20, 1 }
  0x2c   : > { %p211_p6 = pnand %p1065_p2, %p210_p0 }
  0x2d   : > { %s216_s13 = sand.u32 (!%p211_p6), 1, %s837_s16  }
  0x2e   : > { %214 = sbr.rel (%p211_p6) target bundleno = 493 (0x1ed), region = 36  ;;  %s626_s14 = sshll.u32 (!%p211_p6), %s216_s13, 6 }
  0x2f   : > { %s217_s15 = scalar_lea.sflag (!%p211_p6), [#allocation4], %s216_s13  ;;  %s987_s21 = scalar_lea.vmem (!%p211_p6), [#allocation3], %s626_s14 }
  0x35   : > { %828 = dma.done.wait (%p927_p8), %s217_s15, 1024  }
  0x36   : > { %830 = vsyncadd (%p927_p8), %s217_s15, 4294966272  ;;  %s627_s11 = sshll.u32 %s216_s13, 4  ;;  %p258_p9 = scmp.lt.s32.totalorder %s845_s18, 2 }
  0x37   : > { %s1001_s24 = scalar_lea.vmem [#allocation5], %s627_s11  ;;  %p628_p11 = scmp.ne.s32.totalorder %s845_s18, 0 }
  0x38   : > { %s995_s8 = scalar_select %p258_p9, %s845_s18, 2 }
  0x39   : > { %266 = sbr.rel (%p628_p11) target bundleno = 231 (0xe7), region = 44  ;;  %v667_v0 = vld [vmem:[%s1056_s0 + $0x8] sm:$0xff] (!%p628_p11)   ;;  %v650_v1 = vld [vmem:[%s1056_s0] sm:$0xff] (!%p628_p11)   ;;  %v306_v20 = vlaneseq (!%p628_p11) }
  0x3a   : > { %s260_s23 = scalar_lea.vmem %s1059_s3, %s995_s8  ;;  %v655_v2 = vunpack.c.l.bf16 (!%p628_p11), %v667_v0  ;;  %v651_v3 = vunpack.c.l.bf16 (!%p628_p11), %v650_v1  ;;  %v656_v4 = vunpack.c.h.bf16 (!%p628_p11), %v667_v0  ;;  %v652_v5 = vunpack.c.h.bf16 (!%p628_p11), %v650_v1  ;;  %v304_v24 = vld [vmem:[%s1057_s1] sm:$0x1] (!%p628_p11) }
  0x3b   : > { %v307_v23 = vshrl.u32 (!%p628_p11), %v306_v20, 7  ;;  %v305_v25 = vunpack.c.l.bf16 (!%p628_p11), %v304_v24 }
  0x3c   : > { %v277_v6 = vmul.f32 (!%p628_p11), %v655_v2, %v655_v2  ;;  %v275_v7 = vmul.f32 (!%p628_p11), %v651_v3, %v651_v3  ;;  %v278_v8 = vmul.f32 (!%p628_p11), %v656_v4, %v656_v4  ;;  %v276_v9 = vmul.f32 (!%p628_p11), %v652_v5, %v652_v5 }
  0x3d   : > { %v308_v26 = vsub.s32 (!%p628_p11), 0, %v307_v23 }
  0x3e   : > { %283 = vadd.xlane.f32.xlu1 (!%p628_p11), %v277_v6  ;;  %279 = vadd.xlane.f32.xlu0 (!%p628_p11), %v275_v7 }
  0x3f   : > { %v309_v29 = vrot.slane (!%p628_p11), %v305_v25, %v308_v26 }
  0x42   : > { %285 = vadd.xlane.f32.xlu1 %v278_v8  ;;  %281 = vadd.xlane.f32.xlu0 %v276_v9 }
  0xcb   : > { %v284_v10 = vpop.xlane.xlu1 %283  ;;  %v280_v11 = vpop.xlane.xlu0 %279 }
  0xcc   : > { %v290_v12 = vmul.f32 0.0078125, %v284_v10  ;;  %v288_v13 = vmul.f32 0.0078125, %v280_v11 }
  0xce   : > { %v294_v14 = vadd.f32 1e-06, %v290_v12  ;;  %v292_v15 = vadd.f32 1e-06, %v288_v13 }
  0xcf   : > { %v286_v16 = vpop.xlane.xlu1 %285  ;;  %v282_v17 = vpop.xlane.xlu0 %281 }
  0xd0   : > { %757 = vrsqrt.f32 %v294_v14  ;;  %v291_v18 = vmul.f32 0.0078125, %v286_v16  ;;  %v289_v19 = vmul.f32 0.0078125, %v282_v17 }
  0xd1   : > { %759 = vrsqrt.f32 %v292_v15 }
  0xd2   : > { %v295_v21 = vadd.f32 1e-06, %v291_v18  ;;  %v293_v22 = vadd.f32 1e-06, %v289_v19 }
  0xd4   : > { %761 = vrsqrt.f32 %v295_v21 }
  0xd5   : > { %763 = vrsqrt.f32 %v293_v22 }
  0xda   : > { %v758_v27 = vpop.eup %757 }
  0xdb   : > { %v760_v28 = vpop.eup %759  ;;  %v302_v30 = vmul.f32 %v758_v27, %v655_v2 }
  0xdc   : > { %v300_v32 = vmul.f32 %v760_v28, %v651_v3 }
  0xdd   : > { %v312_v36 = vmul.f32 %v309_v29, %v302_v30 }
  0xde   : > { %v762_v31 = vpop.eup %761  ;;  %v310_v38 = vmul.f32 %v309_v29, %v300_v32 }
  0xdf   : > { %v764_v33 = vpop.eup %763  ;;  %v303_v34 = vmul.f32 %v762_v31, %v656_v4 }
  0xe0   : > { %v301_v35 = vmul.f32 %v764_v33, %v652_v5 }
  0xe1   : > { %v313_v37 = vmul.f32 %v309_v29, %v303_v34 }
  0xe2   : > { %v311_v39 = vmul.f32 %v309_v29, %v301_v35 }
  0xe3   : > { %v315_v40 = vpack.c.bf16 %v313_v37, %v312_v36 }
  0xe4   : > { %v314_v41 = vpack.c.bf16 %v311_v39, %v310_v38 }
  0xe5   : > { %317 = vst [vmem:[#allocation2 + $0x8] sm:$0xff] %v315_v40 }
  0xe6   : > { %316 = vst [vmem:[#allocation2] sm:$0xff] %v314_v41 }
  0xe7 PF: > { %v765_v42 = vld [vmem:[%s987_s21] sm:$0xff]   ;;  %v766_v43 = vld [vmem:[%s987_s21 + $0x8] sm:$0xff]   ;;  %v767_v44 = vld [vmem:[%s987_s21 + $0x10] sm:$0xff]   ;;  %v338_v52 = vlaneseq  ;;  %p1066_p8 = scmp.ne.s32.totalorder %s1063_s28, 0 }
  0xe8   : > { %679 = vmatprep.subr.bf16.mxu0 %v765_v42  ;;  %v768_v45 = vld [vmem:[%s987_s21 + $0x18] sm:$0xff]   ;;  %v769_v47 = vld [vmem:[%s987_s21 + $0x20] sm:$0xff]   ;;  %v770_v48 = vld [vmem:[%s987_s21 + $0x28] sm:$0xff]   ;;  %s642_s13 = sshll.u32 (%p1066_p8), %s845_s18, 2 }
  0xe9   : > { %680 = vmatpush3.bf16.msra.mxu0 %v765_v42  ;;  %v771_v49 = vld [vmem:[%s987_s21 + $0x30] sm:$0xff]   ;;  %v772_v50 = vld [vmem:[%s987_s21 + $0x38] sm:$0xff]   ;;  %v339_v53 = vshrl.u32 %v338_v52, 7  ;;  %s470_s21 = scalar_lea.vmem (%p1066_p8), %s1060_s4, %s642_s13 }
  0xea   : > { %681 = vmatprep.subr.bf16.mxu0 %v766_v43  ;;  %v336_v54 = vld [vmem:[%s260_s23] sm:$0x1] }
  0xeb   : > { %v337_v55 = vunpack.c.l.bf16 %v336_v54  ;;  %v340_v56 = vsub.s32 0, %v339_v53 }
  0xec   : > { %v319_v51 = vld [vmem:[#allocation2 + $0x8] sm:$0xff] }
  0xed   : > { %682 = vmatpush3.bf16.msra.mxu0 %v766_v43  ;;  %v318_v46 = vld [vmem:[#allocation2] sm:$0xff]  ;;  %v341_v57 = vrot.slane %v337_v55, %v340_v56 }
  0xee   : > { %683 = vmatprep.subr.bf16.mxu0 %v767_v44  ;;  %695 = vmatprep.mubr.bf16.mxu0 %v318_v46 }
  0xf1   : > { %684 = vmatpush3.bf16.msra.mxu0 %v767_v44 }
  0xf2   : > { %685 = vmatprep.subr.bf16.mxu0 %v768_v45 }
  0xf5   : > { %686 = vmatpush3.bf16.msra.mxu0 %v768_v45 }
  0xf6   : > { %687 = vmatprep.subr.bf16.mxu0 %v769_v47 }
  0xf9   : > { %688 = vmatpush3.bf16.msra.mxu0 %v769_v47 }
  0xfa   : > { %689 = vmatprep.subr.bf16.mxu0 %v770_v48 }
  0xfd   : > { %690 = vmatpush3.bf16.msra.mxu0 %v770_v48 }
  0xfe   : > { %691 = vmatprep.subr.bf16.mxu0 %v771_v49 }
 0x101   : > { %692 = vmatpush3.bf16.msra.mxu0 %v771_v49 }
 0x102   : > { %693 = vmatprep.subr.bf16.mxu0 %v772_v50 }
 0x105   : > { %694 = vmatpush3.bf16.msra.mxu0 %v772_v50 }
 0x108   : > { %696 = vmatmul.mubr.bf16.vlgmr.msra.gmra.mrb[0].mxu0 %v319_v51 }
 0x1db   : > { %v697_v58 = vpop.f32.mrb[0].mxu0 }
 0x1dc   : > { %v424_v59 = vpop.f32.mrb[1].mxu0  ;;  %v433_v61 = vadd.f32 %v697_v58, %v341_v57 }
 0x1dd   : > { %v698_v60 = vpop.f32.mrb[2].mxu0  ;;  %v425_v0 = vadd.f32 %v424_v59, %v341_v57  ;;  %465 = sbr.rel (!%p1066_p8) target bundleno = 493 (0x1ed), region = 48 }
 0x1de   : > { %v436_v62 = vadd.f32 %v698_v60, %v341_v57  ;;  %v427_v63 = vpop.f32.mrb[3].mxu0 }
 0x1df   : > { %v428_v1 = vadd.f32 %v427_v63, %v341_v57 }
 0x1e0   : > { %v665_v2 = vpack.c.bf16 %v436_v62, %v433_v61 }
 0x1e1   : > { %v660_v3 = vpack.c.bf16 %v428_v1, %v425_v0 }
 0x1e2   : > { %668 = vst [vmem:[%s1001_s24 + $0x8] sm:$0xff] %v665_v2  }
 0x1e3   : > { %661 = vst [vmem:[%s1001_s24] sm:$0xff] %v660_v3  }
 0x1e9   : > { %v490_v6 = vld [vmem:[%s1001_s24 + $0x8] sm:$0xf]  ;;  %v492_v7 = vld [vmem:[%s1001_s24 + $0xc] sm:$0xf] }
 0x1ea   : > { %v486_v4 = vld [vmem:[%s1001_s24] sm:$0xf]  ;;  %v488_v5 = vld [vmem:[%s1001_s24 + $0x4] sm:$0xf]  ;;  %491 = vst [vmem:[%s470_s21 + $0x18] sm:$0xf] %v490_v6 }
 0x1eb   : > { %487 = vst [vmem:[%s470_s21] sm:$0xf] %v486_v4  ;;  %489 = vst [vmem:[%s470_s21 + $0xc] sm:$0xf] %v488_v5 }
 0x1ec   : > { %493 = vst [vmem:[%s470_s21 + $0x24] sm:$0xf] %v492_v7 }
 0x1ed PF: > { %s17_s20 = sadd.s32 1, %s853_s20   ;;  %s1067_s15 = smov %s837_s16 }
 0x1ee   : > { %p14_p12 = scmp.ge.s32.totalorder %s17_s20, 5   ;;  %s1068_s16 = smov %s841_s17 }
 0x1ef   : > { %s1069_s17 = smov %s932_s27  ;;  %s1070_s18 = smov %s849_s19 }
 0x1f0   : > { %s1071_s19 = smov %s1073_s22  ;;  %16 = sbr.rel (!%p14_p12) target bundleno = 4 (0x4), region = 127 }
 0x1f7   :  { %534 = vsyncpa [#allocation4], 1 }
 0x1f8   :  { %536 = vsyncpa [#allocation4 + $0x1], 1 }

// kernel: qwen_block_forward.6
= control target key start
LH: loop header
LB: loop body
LE: loop exit
PB: predicated region body
PF: predicated region fallthrough
CT: control target
= control target key end

     0   :  { %s1223_s18 = smov 0   ;;  %s1225_s19 = smov 0   ;;  %s1460_s0 = inlined_call_operand.vmem [shape: bf16[2,16,384], index: 0, kind: input, shape index: {}, may-alias: {0,1,2}]   ;;  %s1461_s1 = inlined_call_operand.vmem [shape: bf16[2,16,384], index: 1, kind: input, shape index: {}, may-alias: {0,1,2}]   ;;  %s1462_s2 = inlined_call_operand.vmem [shape: bf16[2,16,384], index: 2, kind: input, shape index: {}, may-alias: {0,1,2}]   ;;  %s1463_s3 = inlined_call_operand.vmem [shape: f32[16,64], index: 3, kind: input, shape index: {}]   ;;  %s1464_s4 = inlined_call_operand.vmem [shape: f32[16,64], index: 4, kind: input, shape index: {}]   ;;  %s1465_s5 = inlined_call_operand.vmem [shape: bf16[2,16,128], index: 5, kind: output, shape index: {}]  }
   0x1   :  { %s1227_s20 = smov 0   ;;  %s1229_s21 = smov 0  }
   0x2   :  { %s1231_s22 = smov 0  }
   0x3 LB: > { %s27_s23 = sadd.s32 1, %s1182_s21  ;;  %p43_p1 = scmp.ne.s32.totalorder %s1174_s19, %s1170_s18  ;;  %s1186_s22 = sphi %s1231_s22, %s15_s22   ;;  %s1182_s21 = sphi %s1229_s21, %s1470_s21   ;;  %s1178_s20 = sphi %s1227_s20, %s1469_s20   ;;  %s1174_s19 = sphi %s1225_s19, %s1468_s19   ;;  %s1170_s18 = sphi %s1223_s18, %s1467_s18  }
   0x4   : > { %p29_p0 = scmp.ge.s32.totalorder %s27_s23, 2  ;;  %p44_p2 = scmp.eq.s32.totalorder %s1186_s22, 0 }
   0x5   : > { %s36_s26 = sadd.s32 1, %s1174_s19  ;;  %p986_p5 = scmp.ge.s32.totalorder %s1186_s22, 2 }
   0x6   : > { %s1472_s23 = smov (%p29_p0, %s27_s23), 0  ;;  %p1254_p3 = por %p44_p2, %p43_p1 }
   0x7   : > { %s31_s25 = ssub.s32 %s1182_s21, %s1472_s23  ;;  %205 = sbr.rel (%p986_p5) target bundleno = 35 (0x23), region = 24 }
   0x8   : > { %p34_p4 = scmp.eq.s32.totalorder %s31_s25, 0 }
   0xa   : > { %s1262_s27 = scalar_select %p34_p4, %s1174_s19, %s36_s26  }
   0xe   : > { %208 = sbr.rel (!%p1254_p3) target bundleno = 21 (0x15), region = 28  ;;  %s210_s28 = sand.u32 (%p1254_p3), 1, %s1174_s19  }
   0xf   : > { %s1060_s29 = smul.u32 (%p1254_p3), 24, %s1182_s21  ;;  %s987_s30 = sshll.u32 (%p1254_p3), %s210_s28, 3 }
  0x10   : > { %s212_s9 = scalar_lea.vmem (%p1254_p3), [#allocation2], %s987_s30 }
  0x11   : > { %s216_s8 = scalar_lea.vmem (%p1254_p3), %s1460_s0, %s1060_s29 }
  0x12   : > { %v232_v0 = vld [vmem:[%s216_s8] sm:$0xf] (%p1254_p3)  ;;  %v234_v1 = vld [vmem:[%s216_s8 + $0xc] sm:$0xf] (%p1254_p3) }
  0x13   : > { %233 = vst [vmem:[%s212_s9] sm:$0xf] (%p1254_p3), %v232_v0  ;;  %235 = vst [vmem:[%s212_s9 + $0x4] sm:$0xf] (%p1254_p3), %v234_v1 }
  0x15 PF: > { %262 = sbr.rel (!%p1254_p3) target bundleno = 28 (0x1c), region = 69  ;;  %s264_s10 = sand.u32 (%p1254_p3), 1, %s1174_s19  }
  0x16   : > { %s990_s11 = smul.u32 (%p1254_p3), 24, %s1182_s21  ;;  %s989_s12 = sshll.u32 (%p1254_p3), %s264_s10, 3 }
  0x17   : > { %s266_s16 = scalar_lea.vmem (%p1254_p3), [#allocation3], %s989_s12 }
  0x18   : > { %s894_s15 = scalar_lea.vmem (%p1254_p3), %s1461_s1, %s990_s11 }
  0x19   : > { %v991_v2 = vld [vmem:[%s894_s15 + $0x4] sm:$0xf] (%p1254_p3)  ;;  %v992_v3 = vld [vmem:[%s894_s15 + $0x10] sm:$0xf] (%p1254_p3) }
  0x1a   : > { %288 = vst [vmem:[%s266_s16] sm:$0xf] (%p1254_p3), %v991_v2  ;;  %290 = vst [vmem:[%s266_s16 + $0x4] sm:$0xf] (%p1254_p3), %v992_v3 }
  0x1c PF: > { %317 = sbr.rel (!%p1254_p3) target bundleno = 35 (0x23), region = 110  ;;  %s319_s17 = sand.u32 (%p1254_p3), 1, %s1174_s19  }
  0x1d   : > { %s994_s25 = smul.u32 (%p1254_p3), 24, %s1182_s21  ;;  %s993_s26 = sshll.u32 (%p1254_p3), %s319_s17, 3 }
  0x1e   : > { %s321_s6 = scalar_lea.vmem (%p1254_p3), [#allocation4], %s993_s26 }
  0x1f   : > { %s901_s30 = scalar_lea.vmem (%p1254_p3), %s1462_s2, %s994_s25 }
  0x20   : > { %v995_v4 = vld [vmem:[%s901_s30 + $0x8] sm:$0xf] (%p1254_p3)  ;;  %v996_v5 = vld [vmem:[%s901_s30 + $0x14] sm:$0xf] (%p1254_p3) }
  0x21   : > { %343 = vst [vmem:[%s321_s6] sm:$0xf] (%p1254_p3), %v995_v4  ;;  %345 = vst [vmem:[%s321_s6 + $0x4] sm:$0xf] (%p1254_p3), %v996_v5 }
  0x23 PF: > { %p997_p6 = scmp.ge.s32.totalorder %s1186_s22, 1  ;;  %p371_p7 = scmp.lt.s32.totalorder %s1186_s22, 3 }
  0x25   : > { %p372_p8 = pnand %p997_p6, %p371_p7 }
  0x26   : > { %s378_s24 = sand.u32 (!%p372_p8), 1, %s1170_s18   ;;  %v1188_v13 = vmov (!%p372_p8), 0.0   ;;  %s1189_s18 = smov (!%p372_p8), 32   ;;  %vm1191_vm0 = vmmov (!%p372_p8), 0   ;;  %vm480_vm1 = vcmask (!%p372_p8), 261120   ;;  %v1334_v22 = vld [vmem:[%s1464_s4] sm:$0xff] (!%p372_p8)  ;;  %v455_v54 = vlaneseq (!%p372_p8) }
  0x27   : > { %375 = sbr.rel (%p372_p8) target bundleno = 1655 (0x677), region = 151  ;;  %s1289_s7 = sshll.u32 (!%p372_p8), %s378_s24, 3  ;;  %1036 = vmatprep.subr.bf16.mxu0 (!%p372_p8), %v1188_v13  ;;  %1042 = vmatprep.subr.bf16.mxu1 (!%p372_p8), %v1188_v13  ;;  %v1339_v23 = vld [vmem:[%s1463_s3] sm:$0xff] (!%p372_p8)  ;;  %v452_v24 = vld [vmem:[%s1463_s3 + $0x8] sm:$0xff] (!%p372_p8)  ;;  %vm519_vm2 = vcmask (!%p372_p8), 523264   ;;  %vm569_vm4 = vcmask (!%p372_p8), 130048  }
  0x28   : > { %s387_s8 = scalar_lea.vmem (!%p372_p8), [#allocation3], %s1289_s7  ;;  %s380_s9 = scalar_lea.vmem (!%p372_p8), [#allocation2], %s1289_s7  ;;  %1038 = vmatprep.mubr.msk.bf16.mxu0 (!%p372_p8), %vm1191_vm0, %v1188_v13  ;;  %1044 = vmatprep.mubr.msk.bf16.mxu1 (!%p372_p8), %vm1191_vm0, %v1188_v13  ;;  %v1348_v27 = vld [vmem:[%s1464_s4 + $0x8] sm:$0xff] (!%p372_p8)  ;;  %v1368_v55 = vshrl.u32 (!%p372_p8), %v455_v54, 7  ;;  %v1370_v56 = vand.u32 (!%p372_p8), 127, %v455_v54 }
  0x29   : > { %v1020_v6 = vld [vmem:[%s387_s8] sm:$0xff] (!%p372_p8)   ;;  %v1016_v7 = vld [vmem:[%s380_s9] sm:$0xff] (!%p372_p8)   ;;  %s1190_s10 = smov (!%p372_p8), 96   ;;  %s1192_s26 = smov (!%p372_p8), 64  }
  0x2a   : > { %v1293_v8 = vunpack.c.l.bf16 (!%p372_p8), %v1020_v6  ;;  %v1295_v9 = vunpack.c.h.bf16 (!%p372_p8), %v1020_v6  ;;  %v1297_v10 = vunpack.c.l.bf16 (!%p372_p8), %v1016_v7  ;;  %v1308_v16 = vunpack.c.h.bf16 (!%p372_p8), %v1016_v7  ;;  %s394_s28 = scalar_lea.vmem (!%p372_p8), [#allocation4], %s1289_s7  ;;  %p432_p9 = scmp.lt.s32.totalorder (!%p372_p8), %s1178_s20, 1 }
  0x2b   : > { %v1373_v57 = vadd.s32 (!%p372_p8), 8, %v1368_v55  ;;  %vm460_vm3 = vcmp.le.s32.totalorder (!%p372_p8), %v1370_v56, %v1368_v55 }
  0x2c   : > { %v1106_v11 = vpack.i.bf16 (!%p372_p8), %v1295_v9, %v1293_v8  ;;  %v492_v12 = vsub.f32 (!%p372_p8), 0.0, %v1293_v8  ;;  %v493_v14 = vsub.f32 (!%p372_p8), 0.0, %v1295_v9  ;;  %v462_v15 = vsub.f32 (!%p372_p8), 0.0, %v1297_v10 }
  0x2d   : > { %v1316_v17 = vpack.i.bf16 (!%p372_p8), %v1308_v16, %v1297_v10  ;;  %v463_v18 = vsub.f32 (!%p372_p8), 0.0, %v1308_v16  ;;  %v512_v31 = vmul.f32 (!%p372_p8), %v1293_v8, %v1339_v23  ;;  %v513_v32 = vmul.f32 (!%p372_p8), %v1295_v9, %v452_v24 }
  0x2e   : > { %1107 = vrot.lane.b32.xlu1 %v1106_v11, %s1189_s18  ;;  %496 = vrot.lane.b32.xlu0 %v492_v12, %s1190_s10  ;;  %v484_v41 = vmul.f32 %v1308_v16, %v452_v24  ;;  %v483_v42 = vmul.f32 %v1297_v10, %v1339_v23  ;;  %vm461_vm5 = vcmp.le.s32.totalorder %v1370_v56, %v1373_v57  ;;  %s1474_s20 = smov (!%p432_p9, %s1178_s20), 1 }
  0x2f   : > { %s1012_s29 = sshll.u32 %s1474_s20, 3 }
  0x30   : > { %s439_s24 = scalar_lea.vmem %s1465_s5, %s1012_s29 }
  0x32   : > { %498 = vrot.lane.b32.xlu0 %v493_v14, %s1190_s10  ;;  %466 = vrot.lane.b32.xlu1 %v462_v15, %s1190_s10 }
  0x36   : > { %1112 = vrot.lane.b32.xlu1 %v1316_v17, %s1189_s18  ;;  %468 = vrot.lane.b32.xlu0 %v463_v18, %s1190_s10 }
  0x3a   : > { %682 = vrot.lane.b32.xlu0 %v492_v12, %s1189_s18  ;;  %684 = vrot.lane.b32.xlu1 %v493_v14, %s1189_s18 }
  0x3e   : > { %1117 = vrot.lane.b32.xlu0 %v1106_v11, %s1190_s10 }
  0xa0   : > { %v1108_v19 = vpop.permute.xlu1 %1107  ;;  %v497_v20 = vpop.permute.xlu0 %496 }
  0xa1   : > { %v1109_v21 = vunpack.i.l.bf16 %v1108_v19  ;;  %v1110_v25 = vunpack.i.h.bf16 %v1108_v19 }
  0xa3   : > { %v510_v26 = vsel %vm480_vm1, %v497_v20, %v1109_v21 }
  0xa4   : > { %v514_v28 = vmul.f32 %v510_v26, %v1334_v22  ;;  %v499_v29 = vpop.permute.xlu0 %498  ;;  %v467_v30 = vpop.permute.xlu1 %466 }
  0xa5   : > { %v511_v33 = vsel %vm480_vm1, %v499_v29, %v1110_v25 }
  0xa6   : > { %v515_v34 = vmul.f32 %v511_v33, %v1348_v27  ;;  %v516_v37 = vadd.f32 %v514_v28, %v512_v31 }
  0xa8   : > { %v1113_v35 = vpop.permute.xlu1 %1112  ;;  %v469_v36 = vpop.permute.xlu0 %468  ;;  %v517_v38 = vadd.f32 %v515_v34, %v513_v32 }
  0xa9   : > { %v1115_v39 = vunpack.i.h.bf16 %v1113_v35  ;;  %v1114_v40 = vunpack.i.l.bf16 %v1113_v35 }
  0xaa   : > { %v518_v43 = vpack.c.bf16 %v517_v38, %v516_v37 }
  0xab   : > { %v481_v44 = vsel %vm480_vm1, %v467_v30, %v1114_v40  ;;  %v482_v45 = vsel %vm480_vm1, %v469_v36, %v1115_v39 }
  0xac   : > { %v485_v46 = vmul.f32 %v481_v44, %v1334_v22  ;;  %v486_v47 = vmul.f32 %v482_v45, %v1348_v27  ;;  %v524_v48 = vsel %vm519_vm2, %v518_v43, 0  ;;  %v683_v2 = vpop.permute.xlu0 %682  ;;  %v685_v5 = vpop.permute.xlu1 %684  ;;  %v1131_v44 = vld [vmem:[%s394_s28] sm:$0xff]  }
  0xad   : > { %1037 = vmatpush3.bf16.xpose.msra.mxu0 %v524_v48  ;;  %1043 = vmatpush3.bf16.msra.mxu1 %v1131_v44 }
  0xae   : > { %v487_v49 = vadd.f32 %v485_v46, %v483_v42  ;;  %v488_v50 = vadd.f32 %v486_v47, %v484_v41  ;;  %1054 = vmatprep.subr.bf16.mxu0 %v1188_v13  ;;  %1048 = vmatprep.subr.bf16.mxu1 %v1188_v13 }
  0xb0   : > { %v489_v51 = vmul.f32 0.125, %v487_v49  ;;  %v490_v52 = vmul.f32 0.125, %v488_v50  ;;  %v1118_v3 = vpop.permute.xlu0 %1117 }
  0xb1   : > { %v1120_v4 = vunpack.i.h.bf16 %v1118_v3  ;;  %v1119_v6 = vunpack.i.l.bf16 %v1118_v3 }
  0xb2   : > { %v491_v53 = vpack.c.bf16 %v490_v52, %v489_v51 }
  0xb3   : > { %v695_v7 = vsel %vm480_vm1, %v685_v5, %v1120_v4  ;;  %v694_v12 = vsel %vm480_vm1, %v683_v2, %v1119_v6 }
  0xb4   : > { %1039 = vmatmul.mubr.msk.bf16.vlgmr.msra.gmra.mrb[0].mxu0 %vm519_vm2, %v491_v53  ;;  %v699_v11 = vmul.f32 %v695_v7, %v1348_v27  ;;  %v698_v14 = vmul.f32 %v694_v12, %v1334_v22 }
  0xb5   : > { %1056 = vmatprep.mubr.msk.bf16.mxu0 %vm1191_vm0, %v1188_v13 }
 0x187   : > { %v560_v58 = vpop.f32.mrb[0].mxu0 }
 0x188   : > { %v567_v59 = vsel %vm460_vm3, %v560_v58, -1e+30  ;;  %v1040_v60 = vpop.f32.mrb[1].mxu0 }
 0x189   : > { %v563_v61 = vpop.f32.mrb[2].mxu0  ;;  %v570_v62 = vsel %vm569_vm4, %v567_v59, -inf }
 0x18a   : > { %v568_v63 = vsel %vm461_vm5, %v563_v61, -1e+30  ;;  %571 = vmax.xlane.f32.xlu1 %v570_v62  ;;  %v1041_v0 = vpop.f32.mrb[3].mxu0 }
 0x18b   : > { %v573_v1 = vsel %vm569_vm4, %v568_v63, -inf }
 0x18c   : > { %574 = vmax.xlane.f32.xlu0 %v573_v1 }
 0x19b   : > { %645 = vrot.lane.b32.xlu1 %v463_v18, %s1189_s18 }
 0x19f   : > { %1122 = vrot.lane.b32.xlu1 %v1316_v17, %s1190_s10 }
 0x1a2   : > { %643 = vrot.lane.b32.xlu0 %v462_v15, %s1189_s18 }
 0x1a3   : > { %661 = vrot.lane.b32.xlu1 %v452_v24, %s1192_s26 }
 0x1a6   : > { %659 = vrot.lane.b32.xlu0 %v1339_v23, %s1192_s26 }
 0x1a7   : > { %704 = vrot.lane.b32.xlu1 %v699_v11, %s1192_s26 }
 0x1aa   : > { %702 = vrot.lane.b32.xlu0 %v698_v14, %s1192_s26 }
 0x217   : > { %v572_v17 = vpop.xlane.xlu1 %571 }
 0x218   : > { %v576_v29 = vsub.f32 %v567_v59, %v572_v17 }
 0x219   : > { %v575_v18 = vpop.xlane.xlu0 %574 }
 0x21a   : > { %v578_v30 = vmul.f32 1.442695, %v576_v29  ;;  %v577_v31 = vsub.f32 %v568_v63, %v575_v18 }
 0x21b   : > { %v646_v19 = vpop.permute.xlu1 %645 }
 0x21c   : > { %1132 = vpow2.f32 %v578_v30  ;;  %v580_v32 = vmul.f32 1.442695, %v577_v31 }
 0x21d   : > { %v644_v20 = vpop.permute.xlu0 %643 }
 0x21e   : > { %1134 = vpow2.f32 %v580_v32 }
 0x21f   : > { %v1123_v15 = vpop.permute.xlu1 %1122 }
 0x220   : > { %v1125_v21 = vunpack.i.h.bf16 %v1123_v15  ;;  %v1124_v25 = vunpack.i.l.bf16 %v1123_v15 }
 0x221   : > { %v660_v36 = vpop.permute.xlu0 %659 }
 0x222   : > { %v655_v24 = vsel %vm480_vm1, %v644_v20, %v1124_v25  ;;  %v656_v26 = vsel %vm480_vm1, %v646_v19, %v1125_v21  ;;  %v696_v38 = vmul.f32 %v1293_v8, %v660_v36  ;;  %v665_v46 = vmul.f32 %v1297_v10, %v660_v36 }
 0x223   : > { %v667_v28 = vmul.f32 %v655_v24, %v1334_v22  ;;  %v668_v23 = vmul.f32 %v656_v26, %v1348_v27  ;;  %v662_v27 = vpop.permute.xlu1 %661 }
 0x224   : > { %v697_v37 = vmul.f32 %v1295_v9, %v662_v27  ;;  %v666_v45 = vmul.f32 %v1308_v16, %v662_v27 }
 0x225   : > { %673 = vrot.lane.b32.xlu1 %v668_v23, %s1192_s26  ;;  %671 = vrot.lane.b32.xlu0 %v667_v28, %s1192_s26  ;;  %v703_v40 = vpop.permute.xlu0 %702 }
 0x226   : > { %v1133_v33 = vpop.eup %1132  ;;  %v708_v42 = vadd.f32 %v703_v40, %v696_v38 }
 0x227   : > { %v582_v34 = vsel %vm569_vm4, %v1133_v33, 0.0  ;;  %v705_v39 = vpop.permute.xlu1 %704 }
 0x228   : > { %v1135_v35 = vpop.eup %1134  ;;  %v709_v41 = vadd.f32 %v705_v39, %v697_v37 }
 0x229   : > { %v585_v22 = vsel %vm569_vm4, %v1135_v35, 0.0 }
 0x22a   : > { %v710_v43 = vpack.c.bf16 %v709_v41, %v708_v42 }
 0x244   : > { %583 = vadd.xlane.f32.xlu0 %v582_v34 }
 0x249   : > { %586 = vadd.xlane.f32.xlu1 %v585_v22 }
 0x25a   : > { %715 = vrot.lane.b32.xlu0 %v710_v43, %s1192_s26 }
 0x297   : > { %v674_v47 = vpop.permute.xlu1 %673  ;;  %v672_v9 = vpop.permute.xlu0 %671 }
 0x298   : > { %v678_v48 = vadd.f32 %v674_v47, %v666_v45  ;;  %v677_v8 = vadd.f32 %v672_v9, %v665_v46 }
 0x29a   : > { %v680_v49 = vmul.f32 0.125, %v678_v48  ;;  %v679_v50 = vmul.f32 0.125, %v677_v8 }
 0x29c   : > { %v681_v51 = vpack.c.bf16 %v680_v49, %v679_v50 }
 0x29e   : > { %712 = vrot.lane.b32.xlu1 %v681_v51, %s1192_s26 }
 0x2d1   : > { %v584_v52 = vpop.xlane.xlu0 %583 }
 0x2d2   : > { %1136 = vrcp.f32 %v584_v52 }
 0x2d5   : > { %v716_v16 = vpop.permute.xlu0 %715 }
 0x2d6   : > { %v587_v53 = vpop.xlane.xlu1 %586  ;;  %v721_v10 = vsel %vm519_vm2, %v716_v16, 0 }
 0x2d7   : > { %1138 = vrcp.f32 %v587_v53 }
 0x2dc   : > { %v1137_v54 = vpop.eup %1136 }
 0x2dd   : > { %v590_v59 = vmul.f32 %v1137_v54, %v1133_v33 }
 0x2e1   : > { %v1139_v58 = vpop.eup %1138 }
 0x2e2   : > { %v591_v60 = vmul.f32 %v1139_v58, %v1135_v35 }
 0x2e4   : > { %v592_v61 = vpack.c.bf16 %v591_v60, %v590_v59 }
 0x2e6   : > { %1045 = vmatmul.mubr.msk.bf16.vlgmr.msra.gmra.mrb[0].mxu1 %vm569_vm4, %v592_v61 }
 0x2e7   : > { %1049 = vmatpush3.bf16.xpose.msra.mxu1 %v721_v10  ;;  %1050 = vmatprep.mubr.msk.bf16.mxu1 %vm1191_vm0, %v1188_v13 }
 0x310   : > { %v713_v62 = vpop.permute.xlu1 %712 }
 0x311   : > { %1051 = vmatmul.mubr.msk.bf16.vlgmr.msra.gmra.mrb[4].mxu1 %vm519_vm2, %v713_v62 }
 0x3b9   : > { %v636_v63 = vpop.f32.mrb[0].mxu1 }
 0x3ba   : > { %v1046_v0 = vpop.f32.mrb[1].mxu1 }
 0x3bb   : > { %v639_v1 = vpop.f32.mrb[2].mxu1 }
 0x3bc   : > { %v1047_v2 = vpop.f32.mrb[3].mxu1 }
 0x3e4   : > { %v757_v3 = vpop.f32.mrb[4].mxu1 }
 0x3e5   : > { %v764_v4 = vsel %vm460_vm3, %v757_v3, -1e+30  ;;  %v1052_v5 = vpop.f32.mrb[5].mxu1 }
 0x3e6   : > { %v760_v6 = vpop.f32.mrb[6].mxu1  ;;  %v766_v7 = vsel %vm569_vm4, %v764_v4, -inf }
 0x3e7   : > { %v765_v13 = vsel %vm461_vm5, %v760_v6, -1e+30  ;;  %767 = vmax.xlane.f32.xlu0 %v766_v7  ;;  %v1053_v11 = vpop.f32.mrb[7].mxu1 }
 0x3e8   : > { %v769_v12 = vsel %vm569_vm4, %v765_v13, -inf }
 0x3e9   : > { %770 = vmax.xlane.f32.xlu1 %v769_v12 }
 0x3fa   : > { %789 = vrot.lane.b32.xlu1 %v1131_v44, %s1192_s26 }
 0x474   : > { %v768_v14 = vpop.xlane.xlu0 %767 }
 0x475   : > { %v772_v17 = vsub.f32 %v764_v4, %v768_v14 }
 0x476   : > { %v771_v18 = vpop.xlane.xlu1 %770 }
 0x477   : > { %v774_v55 = vmul.f32 1.442695, %v772_v17  ;;  %v773_v19 = vsub.f32 %v765_v13, %v771_v18 }
 0x479   : > { %1140 = vpow2.f32 %v774_v55  ;;  %v776_v15 = vmul.f32 1.442695, %v773_v19 }
 0x47a   : > { %v790_v25 = vpop.permute.xlu1 %789 }
 0x47b   : > { %1142 = vpow2.f32 %v776_v15  ;;  %1055 = vmatpush3.bf16.msra.mxu0 %v790_v25 }
 0x483   : > { %v1141_v20 = vpop.eup %1140 }
 0x484   : > { %v778_v21 = vsel %vm569_vm4, %v1141_v20, 0.0 }
 0x485   : > { %v1143_v56 = vpop.eup %1142  ;;  %779 = vadd.xlane.f32.xlu0 %v778_v21 }
 0x486   : > { %v781_v57 = vsel %vm569_vm4, %v1143_v56, 0.0 }
 0x489   : > { %782 = vadd.xlane.f32.xlu0 %v781_v57 }
 0x512   : > { %v780_v24 = vpop.xlane.xlu0 %779 }
 0x513   : > { %1144 = vrcp.f32 %v780_v24 }
 0x516   : > { %v783_v26 = vpop.xlane.xlu0 %782 }
 0x517   : > { %1146 = vrcp.f32 %v783_v26 }
 0x51d   : > { %v1145_v28 = vpop.eup %1144 }
 0x51e   : > { %v786_v29 = vmul.f32 %v1145_v28, %v1141_v20 }
 0x521   : > { %v1147_v23 = vpop.eup %1146 }
 0x522   : > { %v787_v30 = vmul.f32 %v1147_v23, %v1143_v56 }
 0x524   : > { %v788_v31 = vpack.c.bf16 %v787_v30, %v786_v29 }
 0x526   : > { %1057 = vmatmul.mubr.msk.bf16.vlgmr.msra.gmra.mrb[4].mxu0 %vm569_vm4, %v788_v31 }
 0x5f9   : > { %v829_v32 = vpop.f32.mrb[4].mxu0 }
 0x5fa   : > { %v1058_v33 = vpop.f32.mrb[5].mxu0 }
 0x5fb   : > { %v832_v34 = vpop.f32.mrb[6].mxu0 }
 0x5fc   : > { %v1126_v35 = vpack.i.bf16 %v832_v34, %v829_v32  ;;  %v1059_v22 = vpop.f32.mrb[7].mxu0 }
 0x5fe   : > { %1127 = vrot.lane.b32.xlu0 %v1126_v35, %s1192_s26 }
 0x670   : > { %v1128_v27 = vpop.permute.xlu0 %1127 }
 0x671   : > { %v1130_v36 = vunpack.i.h.bf16 %v1128_v27  ;;  %v1129_v37 = vunpack.i.l.bf16 %v1128_v27 }
 0x673   : > { %v845_v38 = vsel %vm519_vm2, %v639_v1, %v1130_v36  ;;  %v844_v39 = vsel %vm519_vm2, %v636_v63, %v1129_v37 }
 0x674   : > { %v1026_v40 = vpack.c.bf16 %v845_v38, %v844_v39 }
 0x676   : > { %1027 = vst [vmem:[%s439_s24] sm:$0xff] %v1026_v40  }
 0x677 PF: > { %s15_s22 = sadd.s32 1, %s1186_s22   ;;  %s1467_s18 = smov %s1174_s19 }
 0x678   : > { %p12_p10 = scmp.ge.s32.totalorder %s15_s22, 4   ;;  %s1468_s19 = smov %s1262_s27 }
 0x679   : > { %s1469_s20 = smov %s1182_s21  ;;  %s1470_s21 = smov %s1472_s23 }
 0x67a   :  { %14 = sbr.rel (!%p12_p10) target bundleno = 3 (0x3), region = 214 }

// kernel: qwen_block_forward.7
= control target key start
LH: loop header
LB: loop body
LE: loop exit
PB: predicated region body
PF: predicated region fallthrough
CT: control target
= control target key end

     0   :  { %s347_s1 = inlined_call_operand.vmem [shape: bf16[128,128], index: 1, kind: input, shape index: {}]   ;;  %s348_s0 = inlined_call_operand.vmem [shape: bf16[32,128], index: 0, kind: input, shape index: {}]   ;;  %s349_s2 = inlined_call_operand.vmem [shape: bf16[32,128], index: 2, kind: input, shape index: {}]   ;;  %s350_s3 = inlined_call_operand.vmem [shape: bf16[32,128], index: 3, kind: output, shape index: {}]  }
   0x1   :  { %v275_v0 = vld [vmem:[%s347_s1] sm:$0xff]   ;;  %v276_v1 = vld [vmem:[%s347_s1 + $0x8] sm:$0xff]   ;;  %v277_v2 = vld [vmem:[%s347_s1 + $0x10] sm:$0xff]  }
   0x2   :  { %255 = vmatprep.subr.bf16.mxu0 %v275_v0  ;;  %v278_v3 = vld [vmem:[%s347_s1 + $0x18] sm:$0xff]   ;;  %v283_v4 = vld [vmem:[%s348_s0] sm:$0xff]   ;;  %v280_v6 = vld [vmem:[%s347_s1 + $0x28] sm:$0xff]  }
   0x3   :  { %256 = vmatpush3.bf16.msra.mxu0 %v275_v0  ;;  %271 = vmatprep.mubr.bf16.mxu0 %v283_v4  ;;  %v279_v5 = vld [vmem:[%s347_s1 + $0x20] sm:$0xff]   ;;  %v281_v7 = vld [vmem:[%s347_s1 + $0x30] sm:$0xff]   ;;  %v282_v8 = vld [vmem:[%s347_s1 + $0x38] sm:$0xff]  }
   0x4   :  { %257 = vmatprep.subr.bf16.mxu0 %v276_v1  ;;  %v284_v9 = vld [vmem:[%s348_s0 + $0x8] sm:$0xff]   ;;  %v226_v11 = vld [vmem:[%s349_s2] sm:$0xff]  }
   0x5   :  { %v243_v10 = vld [vmem:[%s349_s2 + $0x8] sm:$0xff]   ;;  %v227_v15 = vunpack.c.l.bf16 %v226_v11  ;;  %v228_v16 = vunpack.c.h.bf16 %v226_v11 }
   0x6   :  { %v231_v12 = vunpack.c.l.bf16 %v243_v10  ;;  %v232_v13 = vunpack.c.h.bf16 %v243_v10 }
   0x7   :  { %258 = vmatpush3.bf16.msra.mxu0 %v276_v1 }
   0x8   :  { %259 = vmatprep.subr.bf16.mxu0 %v277_v2 }
   0xb   :  { %260 = vmatpush3.bf16.msra.mxu0 %v277_v2 }
   0xc   :  { %261 = vmatprep.subr.bf16.mxu0 %v278_v3 }
   0xf   :  { %262 = vmatpush3.bf16.msra.mxu0 %v278_v3 }
  0x10   :  { %263 = vmatprep.subr.bf16.mxu0 %v279_v5 }
  0x13   :  { %264 = vmatpush3.bf16.msra.mxu0 %v279_v5 }
  0x14   :  { %265 = vmatprep.subr.bf16.mxu0 %v280_v6 }
  0x17   :  { %266 = vmatpush3.bf16.msra.mxu0 %v280_v6 }
  0x18   :  { %267 = vmatprep.subr.bf16.mxu0 %v281_v7 }
  0x1b   :  { %268 = vmatpush3.bf16.msra.mxu0 %v281_v7 }
  0x1c   :  { %269 = vmatprep.subr.bf16.mxu0 %v282_v8 }
  0x1f   :  { %270 = vmatpush3.bf16.msra.mxu0 %v282_v8 }
  0x22   :  { %272 = vmatmul.mubr.bf16.vlgmr.msra.gmra.mrb[0].mxu0 %v284_v9 }
  0xf5   :  { %v273_v14 = vpop.f32.mrb[0].mxu0 }
  0xf6   :  { %v141_v17 = vpop.f32.mrb[1].mxu0  ;;  %v181_v19 = vadd.f32 %v273_v14, %v231_v12 }
  0xf7   :  { %v274_v18 = vpop.f32.mrb[2].mxu0  ;;  %v179_v22 = vadd.f32 %v227_v15, %v141_v17 }
  0xf8   :  { %v182_v20 = vadd.f32 %v274_v18, %v232_v13  ;;  %v144_v21 = vpop.f32.mrb[3].mxu0 }
  0xf9   :  { %v180_v23 = vadd.f32 %v228_v16, %v144_v21 }
  0xfa   :  { %v241_v24 = vpack.c.bf16 %v182_v20, %v181_v19 }
  0xfb   :  { %v236_v25 = vpack.c.bf16 %v180_v23, %v179_v22 }
  0xfc   :  { %244 = vst [vmem:[%s350_s3 + $0x8] sm:$0xff] %v241_v24  }
  0xfd   :  { %237 = vst [vmem:[%s350_s3] sm:$0xff] %v236_v25  }

// kernel: qwen_block_forward.8
= control target key start
LH: loop header
LB: loop body
LE: loop exit
PB: predicated region body
PF: predicated region fallthrough
CT: control target
= control target key end

     0   :  { %v615_v40 = vmov 0   ;;  %v61_v53 = vlaneseq  ;;  %s781_s0 = inlined_call_operand.vmem [shape: bf16[32,128], index: 0, kind: input, shape index: {}]   ;;  %s782_s2 = inlined_call_operand.vmem [shape: bf16[128,256], index: 2, kind: input, shape index: {}]   ;;  %s783_s3 = inlined_call_operand.vmem [shape: bf16[128,256], index: 3, kind: input, shape index: {}]   ;;  %s784_s1 = inlined_call_operand.vmem [shape: bf16[1,128], index: 1, kind: input, shape index: {}]   ;;  %s785_s4 = inlined_call_operand.vmem [shape: bf16[32,256], index: 4, kind: output, shape index: {}]  }
   0x1   :  { %v518_v0 = vld [vmem:[%s781_s0] sm:$0xff]   ;;  %v525_v1 = vld [vmem:[%s781_s0 + $0x8] sm:$0xff]   ;;  %v533_v12 = vld [vmem:[%s782_s2 + $0x14] ss:$8 sps:$4 sm:$0xff]   ;;  %203 = vmatprep.mubr.bf16.mxu0 %v615_v40  ;;  %352 = vmatprep.mubr.bf16.mxu1 %v615_v40 }
   0x2   :  { %v647_v2 = vunpack.c.l.bf16 %v518_v0  ;;  %v649_v3 = vunpack.c.l.bf16 %v525_v1  ;;  %v651_v4 = vunpack.c.h.bf16 %v518_v0  ;;  %v653_v5 = vunpack.c.h.bf16 %v525_v1  ;;  %v527_v6 = vld [vmem:[%s782_s2 + $0x4] ss:$8 sps:$4 sm:$0xff]   ;;  %v531_v8 = vld [vmem:[%s782_s2] ss:$8 sps:$4 sm:$0xff]   ;;  %v535_v15 = vld [vmem:[%s783_s3 + $0x14] ss:$8 sps:$4 sm:$0xff]  }
   0x3   :  { %v529_v7 = vld [vmem:[%s783_s3 + $0x4] ss:$8 sps:$4 sm:$0xff]   ;;  %171 = vmatprep.subr.bf16.mxu0 %v527_v6  ;;  %v532_v11 = vld [vmem:[%s783_s3] ss:$8 sps:$4 sm:$0xff]   ;;  %v537_v16 = vld [vmem:[%s782_s2 + $0x10] ss:$8 sps:$4 sm:$0xff]  }
   0x4   :  { %v30_v9 = vmul.f32 %v647_v2, %v647_v2  ;;  %v32_v10 = vmul.f32 %v649_v3, %v649_v3  ;;  %320 = vmatprep.subr.bf16.mxu1 %v529_v7  ;;  %172 = vmatpush1.bf16.msra.mxu0 %v531_v8  ;;  %v31_v13 = vmul.f32 %v651_v4, %v651_v4  ;;  %v538_v17 = vld [vmem:[%s783_s3 + $0x10] ss:$8 sps:$4 sm:$0xff]   ;;  %v539_v18 = vld [vmem:[%s782_s2 + $0x24] ss:$8 sps:$4 sm:$0xff]   ;;  %v543_v20 = vld [vmem:[%s782_s2 + $0x20] ss:$8 sps:$4 sm:$0xff]  }
   0x5   :  { %v33_v14 = vmul.f32 %v653_v5, %v653_v5  ;;  %321 = vmatpush1.bf16.msra.mxu1 %v532_v11  ;;  %173 = vmatprep.subr.bf16.mxu0 %v533_v12  ;;  %v541_v19 = vld [vmem:[%s783_s3 + $0x24] ss:$8 sps:$4 sm:$0xff]   ;;  %v544_v21 = vld [vmem:[%s783_s3 + $0x20] ss:$8 sps:$4 sm:$0xff]   ;;  %v545_v22 = vld [vmem:[%s782_s2 + $0x34] ss:$8 sps:$4 sm:$0xff]  }
   0x6   :  { %34 = vadd.xlane.f32.xlu0 %v30_v9  ;;  %38 = vadd.xlane.f32.xlu1 %v32_v10  ;;  %v547_v23 = vld [vmem:[%s783_s3 + $0x34] ss:$8 sps:$4 sm:$0xff]   ;;  %v549_v24 = vld [vmem:[%s782_s2 + $0x30] ss:$8 sps:$4 sm:$0xff]   ;;  %v551_v26 = vld [vmem:[%s782_s2 + $0x44] ss:$8 sps:$4 sm:$0xff]  }
   0x7   :  { %322 = vmatprep.subr.bf16.mxu1 %v535_v15  ;;  %v550_v25 = vld [vmem:[%s783_s3 + $0x30] ss:$8 sps:$4 sm:$0xff]   ;;  %v553_v27 = vld [vmem:[%s783_s3 + $0x44] ss:$8 sps:$4 sm:$0xff]   ;;  %v555_v28 = vld [vmem:[%s782_s2 + $0x40] ss:$8 sps:$4 sm:$0xff]  }
   0x8   :  { %174 = vmatpush1.bf16.msra.mxu0 %v537_v16  ;;  %v556_v29 = vld [vmem:[%s783_s3 + $0x40] ss:$8 sps:$4 sm:$0xff]   ;;  %v557_v30 = vld [vmem:[%s782_s2 + $0x54] ss:$8 sps:$4 sm:$0xff]   ;;  %v561_v32 = vld [vmem:[%s782_s2 + $0x50] ss:$8 sps:$4 sm:$0xff]  }
   0x9   :  { %323 = vmatpush1.bf16.msra.mxu1 %v538_v17  ;;  %175 = vmatprep.subr.bf16.mxu0 %v539_v18  ;;  %v559_v31 = vld [vmem:[%s783_s3 + $0x54] ss:$8 sps:$4 sm:$0xff]   ;;  %v562_v33 = vld [vmem:[%s783_s3 + $0x50] ss:$8 sps:$4 sm:$0xff]   ;;  %v563_v34 = vld [vmem:[%s782_s2 + $0x64] ss:$8 sps:$4 sm:$0xff]  }
   0xa   :  { %36 = vadd.xlane.f32.xlu0 %v31_v13  ;;  %40 = vadd.xlane.f32.xlu1 %v33_v14  ;;  %v565_v35 = vld [vmem:[%s783_s3 + $0x64] ss:$8 sps:$4 sm:$0xff]   ;;  %v567_v36 = vld [vmem:[%s782_s2 + $0x60] ss:$8 sps:$4 sm:$0xff]   ;;  %v569_v38 = vld [vmem:[%s782_s2 + $0x74] ss:$8 sps:$4 sm:$0xff]  }
   0xb   :  { %324 = vmatprep.subr.bf16.mxu1 %v541_v19  ;;  %v568_v37 = vld [vmem:[%s783_s3 + $0x60] ss:$8 sps:$4 sm:$0xff]   ;;  %v571_v39 = vld [vmem:[%s783_s3 + $0x74] ss:$8 sps:$4 sm:$0xff]   ;;  %v573_v41 = vld [vmem:[%s782_s2 + $0x70] ss:$8 sps:$4 sm:$0xff]  }
   0xc   :  { %176 = vmatpush1.bf16.msra.mxu0 %v543_v20  ;;  %v574_v42 = vld [vmem:[%s783_s3 + $0x70] ss:$8 sps:$4 sm:$0xff]   ;;  %v62_v56 = vshrl.u32 %v61_v53, 7  ;;  %v59_v57 = vld [vmem:[%s784_s1] sm:$0x1] }
   0xd   :  { %325 = vmatpush1.bf16.msra.mxu1 %v544_v21  ;;  %177 = vmatprep.subr.bf16.mxu0 %v545_v22  ;;  %v60_v58 = vunpack.c.l.bf16 %v59_v57 }
   0xe   :  { %326 = vmatprep.subr.bf16.mxu1 %v547_v23  ;;  %v63_v59 = vsub.s32 0, %v62_v56 }
  0x10   :  { %178 = vmatpush1.bf16.msra.mxu0 %v549_v24  ;;  %v64_v62 = vrot.slane %v60_v58, %v63_v59 }
  0x11   :  { %327 = vmatpush1.bf16.msra.mxu1 %v550_v25  ;;  %179 = vmatprep.subr.bf16.mxu0 %v551_v26 }
  0x12   :  { %328 = vmatprep.subr.bf16.mxu1 %v553_v27 }
  0x14   :  { %180 = vmatpush1.bf16.msra.mxu0 %v555_v28 }
  0x15   :  { %329 = vmatpush1.bf16.msra.mxu1 %v556_v29  ;;  %181 = vmatprep.subr.bf16.mxu0 %v557_v30 }
  0x16   :  { %330 = vmatprep.subr.bf16.mxu1 %v559_v31 }
  0x18   :  { %182 = vmatpush1.bf16.msra.mxu0 %v561_v32 }
  0x19   :  { %331 = vmatpush1.bf16.msra.mxu1 %v562_v33  ;;  %183 = vmatprep.subr.bf16.mxu0 %v563_v34 }
  0x1a   :  { %332 = vmatprep.subr.bf16.mxu1 %v565_v35 }
  0x1c   :  { %184 = vmatpush1.bf16.msra.mxu0 %v567_v36 }
  0x1d   :  { %333 = vmatpush1.bf16.msra.mxu1 %v568_v37  ;;  %185 = vmatprep.subr.bf16.mxu0 %v569_v38 }
  0x1e   :  { %334 = vmatprep.subr.bf16.mxu1 %v571_v39 }
  0x20   :  { %186 = vmatpush1.bf16.msra.mxu0 %v573_v41 }
  0x21   :  { %335 = vmatpush1.bf16.msra.mxu1 %v574_v42 }
  0x93   :  { %v35_v43 = vpop.xlane.xlu0 %34  ;;  %v39_v44 = vpop.xlane.xlu1 %38 }
  0x94   :  { %v43_v45 = vmul.f32 0.0078125, %v35_v43  ;;  %v45_v46 = vmul.f32 0.0078125, %v39_v44 }
  0x96   :  { %v47_v47 = vadd.f32 1e-06, %v43_v45  ;;  %v49_v52 = vadd.f32 1e-06, %v45_v46 }
  0x97   :  { %v37_v48 = vpop.xlane.xlu0 %36  ;;  %v41_v49 = vpop.xlane.xlu1 %40 }
  0x98   :  { %575 = vrsqrt.f32 %v47_v47  ;;  %v44_v50 = vmul.f32 0.0078125, %v37_v48  ;;  %v46_v51 = vmul.f32 0.0078125, %v41_v49 }
  0x9a   :  { %v48_v54 = vadd.f32 1e-06, %v44_v50  ;;  %v50_v55 = vadd.f32 1e-06, %v46_v51 }
  0x9c   :  { %577 = vrsqrt.f32 %v48_v54 }
  0x9d   :  { %579 = vrsqrt.f32 %v49_v52 }
  0x9e   :  { %581 = vrsqrt.f32 %v50_v55 }
  0xa2   :  { %v576_v60 = vpop.eup %575 }
  0xa3   :  { %v55_v61 = vmul.f32 %v576_v60, %v647_v2 }
  0xa5   :  { %v65_v7 = vmul.f32 %v64_v62, %v55_v61 }
  0xa6   :  { %v578_v63 = vpop.eup %577 }
  0xa7   :  { %v580_v0 = vpop.eup %579  ;;  %v56_v1 = vmul.f32 %v578_v63, %v651_v4 }
  0xa8   :  { %v582_v6 = vpop.eup %581  ;;  %v57_v10 = vmul.f32 %v580_v0, %v649_v3 }
  0xa9   :  { %v66_v8 = vmul.f32 %v64_v62, %v56_v1  ;;  %v58_v11 = vmul.f32 %v582_v6, %v653_v5 }
  0xaa   :  { %v67_v12 = vmul.f32 %v64_v62, %v57_v10 }
  0xab   :  { %v69_v9 = vpack.c.bf16 %v66_v8, %v65_v7  ;;  %v68_v13 = vmul.f32 %v64_v62, %v58_v11 }
  0xad   :  { %204 = vmatmul.mubr.bf16.vlgmr.msra.gmra.mrb[0].mxu0 %v69_v9  ;;  %353 = vmatmul.mubr.bf16.vlgmr.msra.gmra.mrb[0].mxu1 %v69_v9  ;;  %v70_v2 = vpack.c.bf16 %v68_v13, %v67_v12 }
  0xae   :  { %213 = vmatprep.mubr.bf16.mxu0 %v615_v40  ;;  %362 = vmatprep.mubr.bf16.mxu1 %v615_v40 }
  0xb5   :  { %214 = vmatmul.mubr.bf16.gmra.mrb[4].mxu0 %v70_v2  ;;  %363 = vmatmul.mubr.bf16.gmra.mrb[4].mxu1 %v70_v2 }
 0x180   :  { %v205_v14 = vpop.f32.mrb[0].mxu0  ;;  %v354_v15 = vpop.f32.mrb[0].mxu1 }
 0x181   :  { %v501_v4 = vmul.f32 -1.442695, %v354_v15  ;;  %v207_v16 = vpop.f32.mrb[1].mxu0  ;;  %v356_v17 = vpop.f32.mrb[1].mxu1 }
 0x182   :  { %v502_v18 = vmul.f32 -1.442695, %v356_v17  ;;  %v209_v19 = vpop.f32.mrb[2].mxu0  ;;  %v358_v20 = vpop.f32.mrb[2].mxu1 }
 0x183   :  { %583 = vpow2.f32 %v501_v4  ;;  %v503_v3 = vmul.f32 -1.442695, %v358_v20  ;;  %v211_v5 = vpop.f32.mrb[3].mxu0  ;;  %v360_v21 = vpop.f32.mrb[3].mxu1 }
 0x184   :  { %585 = vpow2.f32 %v502_v18  ;;  %v504_v22 = vmul.f32 -1.442695, %v360_v21 }
 0x185   :  { %587 = vpow2.f32 %v503_v3 }
 0x186   :  { %589 = vpow2.f32 %v504_v22 }
 0x188   :  { %v766_v23 = vpop.f32.mrb[4].mxu0  ;;  %v364_v24 = vpop.f32.mrb[4].mxu1 }
 0x189   :  { %v505_v25 = vmul.f32 -1.442695, %v364_v24  ;;  %v217_v26 = vpop.f32.mrb[5].mxu0  ;;  %v366_v27 = vpop.f32.mrb[5].mxu1 }
 0x18a   :  { %v506_v28 = vmul.f32 -1.442695, %v366_v27  ;;  %v219_v29 = vpop.f32.mrb[6].mxu0  ;;  %v368_v30 = vpop.f32.mrb[6].mxu1 }
 0x18b   :  { %591 = vpow2.f32 %v505_v25  ;;  %v507_v31 = vmul.f32 -1.442695, %v368_v30  ;;  %v221_v32 = vpop.f32.mrb[7].mxu0  ;;  %v370_v33 = vpop.f32.mrb[7].mxu1 }
 0x18c   :  { %593 = vpow2.f32 %v506_v28  ;;  %v508_v34 = vmul.f32 -1.442695, %v370_v33 }
 0x18d   :  { %v584_v35 = vpop.eup %583  ;;  %595 = vpow2.f32 %v507_v31 }
 0x18e   :  { %v586_v36 = vpop.eup %585  ;;  %v397_v37 = vadd.f32 1.0, %v584_v35  ;;  %597 = vpow2.f32 %v508_v34 }
 0x18f   :  { %v588_v38 = vpop.eup %587  ;;  %v398_v39 = vadd.f32 1.0, %v586_v36 }
 0x190   :  { %v590_v40 = vpop.eup %589  ;;  %599 = vrcp.f32 %v397_v37  ;;  %v399_v41 = vadd.f32 1.0, %v588_v38 }
 0x191   :  { %601 = vrcp.f32 %v398_v39  ;;  %v400_v42 = vadd.f32 1.0, %v590_v40 }
 0x192   :  { %603 = vrcp.f32 %v399_v41 }
 0x193   :  { %605 = vrcp.f32 %v400_v42 }
 0x195   :  { %v592_v43 = vpop.eup %591 }
 0x196   :  { %v594_v44 = vpop.eup %593  ;;  %v401_v45 = vadd.f32 1.0, %v592_v43 }
 0x197   :  { %v596_v46 = vpop.eup %595  ;;  %v402_v47 = vadd.f32 1.0, %v594_v44 }
 0x198   :  { %v598_v48 = vpop.eup %597  ;;  %607 = vrcp.f32 %v401_v45  ;;  %v403_v49 = vadd.f32 1.0, %v596_v46 }
 0x199   :  { %609 = vrcp.f32 %v402_v47  ;;  %v404_v50 = vadd.f32 1.0, %v598_v48 }
 0x19a   :  { %v600_v51 = vpop.eup %599  ;;  %611 = vrcp.f32 %v403_v49 }
 0x19b   :  { %v602_v52 = vpop.eup %601  ;;  %v421_v53 = vmul.f32 %v600_v51, %v354_v15  ;;  %613 = vrcp.f32 %v404_v50 }
 0x19c   :  { %v604_v54 = vpop.eup %603  ;;  %v422_v55 = vmul.f32 %v602_v52, %v356_v17 }
 0x19d   :  { %v606_v56 = vpop.eup %605  ;;  %v429_v57 = vmul.f32 %v421_v53, %v205_v14  ;;  %v423_v58 = vmul.f32 %v604_v54, %v358_v20 }
 0x19e   :  { %v430_v59 = vmul.f32 %v422_v55, %v207_v16  ;;  %v424_v60 = vmul.f32 %v606_v56, %v360_v21 }
 0x19f   :  { %v431_v61 = vmul.f32 %v423_v58, %v209_v19 }
 0x1a0   :  { %v513_v62 = vpack.c.bf16 %v430_v59, %v429_v57  ;;  %v432_v63 = vmul.f32 %v424_v60, %v211_v5 }
 0x1a2   :  { %v608_v0 = vpop.eup %607  ;;  %461 = vst [vmem:[%s785_s4] sm:$0xff] %v513_v62  ;;  %v514_v1 = vpack.c.bf16 %v432_v63, %v431_v61 }
 0x1a3   :  { %v610_v6 = vpop.eup %609  ;;  %v425_v7 = vmul.f32 %v608_v0, %v364_v24 }
 0x1a4   :  { %v612_v8 = vpop.eup %611  ;;  %462 = vst [vmem:[%s785_s4 + $0x8] sm:$0xff] %v514_v1  ;;  %v426_v9 = vmul.f32 %v610_v6, %v366_v27 }
 0x1a5   :  { %v614_v10 = vpop.eup %613  ;;  %v433_v11 = vmul.f32 %v425_v7, %v766_v23  ;;  %v427_v12 = vmul.f32 %v612_v8, %v368_v30 }
 0x1a6   :  { %v434_v13 = vmul.f32 %v426_v9, %v217_v26  ;;  %v428_v2 = vmul.f32 %v614_v10, %v370_v33 }
 0x1a7   :  { %v435_v14 = vmul.f32 %v427_v12, %v219_v29 }
 0x1a8   :  { %v515_v15 = vpack.c.bf16 %v434_v13, %v433_v11  ;;  %v436_v4 = vmul.f32 %v428_v2, %v221_v32 }
 0x1aa   :  { %463 = vst [vmem:[%s785_s4 + $0x10] sm:$0xff] %v515_v15  ;;  %v516_v16 = vpack.c.bf16 %v436_v4, %v435_v14 }
 0x1ac   :  { %464 = vst [vmem:[%s785_s4 + $0x18] sm:$0xff] %v516_v16 }

// kernel: qwen_block_forward.9
= control target key start
LH: loop header
LB: loop body
LE: loop exit
PB: predicated region body
PF: predicated region fallthrough
CT: control target
= control target key end

     0   :  { %s534_s0 = inlined_call_operand.vmem [shape: bf16[32,256], index: 0, kind: input, shape index: {}]   ;;  %s535_s1 = inlined_call_operand.vmem [shape: bf16[256,128], index: 1, kind: input, shape index: {}]   ;;  %s536_s2 = inlined_call_operand.vmem [shape: bf16[32,128], index: 2, kind: input, shape index: {}]   ;;  %s537_s3 = inlined_call_operand.hbm [shape: bf16[32,128], index: 3, kind: output, shape index: {}]  }
   0x1   :  { %v387_v0 = vld [vmem:[%s535_s1 + $0x40] sm:$0xff]   ;;  %v389_v2 = vld [vmem:[%s535_s1 + $0x48] sm:$0xff]   ;;  %v391_v4 = vld [vmem:[%s535_s1 + $0x50] sm:$0xff]  }
   0x2   :  { %v388_v1 = vld [vmem:[%s535_s1] sm:$0xff]   ;;  %340 = vmatprep.subr.bf16.mxu0 %v387_v0  ;;  %368 = vmatprep.subr.bf16.mxu1 %v387_v0  ;;  %v390_v3 = vld [vmem:[%s535_s1 + $0x8] sm:$0xff]   ;;  %v392_v5 = vld [vmem:[%s535_s1 + $0x10] sm:$0xff]  }
   0x3   :  { %341 = vmatpush3.bf16.msra.mxu0 %v388_v1  ;;  %376 = vmatpush3.bf16.msra.mxu1 %v388_v1  ;;  %v393_v6 = vld [vmem:[%s535_s1 + $0x58] sm:$0xff]   ;;  %v395_v8 = vld [vmem:[%s535_s1 + $0x60] sm:$0xff]   ;;  %v397_v10 = vld [vmem:[%s535_s1 + $0x68] sm:$0xff]  }
   0x4   :  { %342 = vmatprep.subr.bf16.mxu0 %v389_v2  ;;  %369 = vmatprep.subr.bf16.mxu1 %v389_v2  ;;  %v394_v7 = vld [vmem:[%s535_s1 + $0x18] sm:$0xff]   ;;  %v396_v9 = vld [vmem:[%s535_s1 + $0x20] sm:$0xff]  }
   0x5   :  { %v405_v11 = vld [vmem:[%s534_s0 + $0x4] ss:$8 sps:$4 sm:$0xff]   ;;  %v408_v12 = vld [vmem:[%s534_s0 + $0x14] ss:$8 sps:$4 sm:$0xff]  }
   0x7   :  { %343 = vmatpush3.bf16.msra.mxu0 %v390_v3  ;;  %377 = vmatpush3.bf16.msra.mxu1 %v390_v3 }
   0x8   :  { %344 = vmatprep.subr.bf16.mxu0 %v391_v4  ;;  %370 = vmatprep.subr.bf16.mxu1 %v391_v4 }
   0xb   :  { %345 = vmatpush3.bf16.msra.mxu0 %v392_v5  ;;  %378 = vmatpush3.bf16.msra.mxu1 %v392_v5 }
   0xc   :  { %346 = vmatprep.subr.bf16.mxu0 %v393_v6  ;;  %371 = vmatprep.subr.bf16.mxu1 %v393_v6 }
   0xf   :  { %347 = vmatpush3.bf16.msra.mxu0 %v394_v7  ;;  %379 = vmatpush3.bf16.msra.mxu1 %v394_v7 }
  0x10   :  { %348 = vmatprep.subr.bf16.mxu0 %v395_v8  ;;  %372 = vmatprep.subr.bf16.mxu1 %v395_v8 }
  0x11   :  { %8 = vsyncpa [#allocation4], 0  ;;  %v398_v13 = vld [vmem:[%s535_s1 + $0x28] sm:$0xff]   ;;  %v399_v14 = vld [vmem:[%s535_s1 + $0x70] sm:$0xff]   ;;  %212 = vmatprep.mubr.bf16.mxu0 %v405_v11  ;;  %220 = vmatprep.mubr.bf16.mxu1 %v408_v12 }
  0x12   :  { %v400_v15 = vld [vmem:[%s535_s1 + $0x30] sm:$0xff]   ;;  %v401_v16 = vld [vmem:[%s535_s1 + $0x78] sm:$0xff]   ;;  %v403_v18 = vld [vmem:[%s534_s0] ss:$8 sps:$4 sm:$0xff]  }
  0x13   :  { %349 = vmatpush3.bf16.msra.mxu0 %v396_v9  ;;  %380 = vmatpush3.bf16.msra.mxu1 %v396_v9  ;;  %v402_v17 = vld [vmem:[%s535_s1 + $0x38] sm:$0xff]   ;;  %v321_v20 = vld [vmem:[%s536_s2] sm:$0xff]   ;;  %v338_v21 = vld [vmem:[%s536_s2 + $0x8] sm:$0xff]  }
  0x14   :  { %350 = vmatprep.subr.bf16.mxu0 %v397_v10  ;;  %373 = vmatprep.subr.bf16.mxu1 %v397_v10  ;;  %v406_v19 = vld [vmem:[%s534_s0 + $0x10] ss:$8 sps:$4 sm:$0xff]   ;;  %v322_v25 = vunpack.c.l.bf16 %v321_v20  ;;  %v326_v27 = vunpack.c.l.bf16 %v338_v21  ;;  %v323_v32 = vunpack.c.h.bf16 %v321_v20  ;;  %v327_v33 = vunpack.c.h.bf16 %v338_v21  ;;  %s433_s0 = smov [#allocation3]  }
  0x15   :  { %s281_s28 = sshll.u32 %s433_s0, 4  ;;  %s282_s28 = int_to_ptr.vmem [resolvable:$true] %s281_s28 }
  0x16   :  { %s409_s2 = scalar_lea.vmem %s282_s28, 256  ;;  %p414_p1 = scmp.lt.s32.totalorder %s282_s28, %s282_s28 }
  0x17   :  { %351 = vmatpush3.bf16.msra.mxu0 %v398_v13  ;;  %381 = vmatpush3.bf16.msra.mxu1 %v398_v13  ;;  %p410_p0 = scmp.ne.s32.totalorder %s282_s28, %s409_s2  ;;  %p415_p2 = scmp.lt.s32.totalorder %s409_s2, %s409_s2 }
  0x18   :  { %352 = vmatprep.subr.bf16.mxu0 %v399_v14  ;;  %374 = vmatprep.subr.bf16.mxu1 %v399_v14 }
  0x19   :  { %p416_p3 = por %p415_p2, %p414_p1 }
  0x1b   :  { %353 = vmatpush3.bf16.msra.mxu0 %v400_v15  ;;  %382 = vmatpush3.bf16.msra.mxu1 %v400_v15  ;;  %p417_p4 = pnand %p416_p3, %p410_p0 }
  0x1c   :  { %354 = vmatprep.subr.bf16.mxu0 %v401_v16  ;;  %375 = vmatprep.subr.bf16.mxu1 %v401_v16 }
  0x1f   :  { %355 = vmatpush3.bf16.msra.mxu0 %v402_v17  ;;  %383 = vmatpush3.bf16.msra.mxu1 %v402_v17 }
  0x22   :  { %213 = vmatmul.mubr.bf16.vlgmr.msra.gmra.mrb[0].mxu0 %v403_v18  ;;  %221 = vmatmul.mubr.bf16.vlgmr.msra.gmra.mrb[0].mxu1 %v406_v19 }
  0xf5   :  { %v356_v22 = vpop.f32.mrb[0].mxu0  ;;  %v362_v23 = vpop.f32.mrb[0].mxu1 }
  0xf6   :  { %v357_v24 = vpop.f32.mrb[1].mxu0  ;;  %v363_v26 = vpop.f32.mrb[1].mxu1 }
  0xf7   :  { %v358_v28 = vadd.f32 %v357_v24, %v356_v22  ;;  %v364_v29 = vadd.f32 %v363_v26, %v362_v23  ;;  %v359_v30 = vpop.f32.mrb[2].mxu0  ;;  %v365_v31 = vpop.f32.mrb[2].mxu1 }
  0xf8   :  { %v360_v34 = vpop.f32.mrb[3].mxu0  ;;  %v366_v35 = vpop.f32.mrb[3].mxu1 }
  0xf9   :  { %v361_v36 = vadd.f32 %v360_v34, %v359_v30  ;;  %v367_v37 = vadd.f32 %v366_v35, %v365_v31  ;;  %v252_v38 = vadd.f32 %v358_v28, %v322_v25  ;;  %v254_v39 = vadd.f32 %v364_v29, %v326_v27 }
  0xfb   :  { %v253_v40 = vadd.f32 %v361_v36, %v323_v32  ;;  %v255_v41 = vadd.f32 %v367_v37, %v327_v33 }
  0xfd   :  { %v331_v42 = vpack.c.bf16 %v253_v40, %v252_v38  ;;  %v336_v43 = vpack.c.bf16 %v255_v41, %v254_v39 }
  0xff   :  { %332 = vst [vmem:[#allocation3] sm:$0xff] %v331_v42   ;;  %339 = vst [vmem:[#allocation3 + $0x8] sm:$0xff] %v336_v43  }
 0x100   :  { %420 = shalt.err (!%p417_p4)
}
 0x101   :  { %s421_s4 = scalar_lea.hbm %s537_s3, 256 }
 0x102   :  { %p422_p5 = scmp.ne.s32.totalorder %s537_s3, %s421_s4  ;;  %p425_p6 = scmp.lt.u32.totalorder %s421_s4, %s537_s3 }
 0x104   :  { %p427_p7 = pnand %p425_p6, %p422_p5 }
 0x106   :  { %430 = shalt.err (!%p427_p7)
}
 0x107   :  { %s434_s9 = smov 64   ;;  %s435_s10 = smov 4  }
 0x108   :  { %287 = dma.vmem_to_hbm [thread:$0]  %s282_s28, 256, %s537_s3, [#allocation4], %s434_s9, %s434_s9, %s435_s10  }
 0x109   :  { %431 = dma.done.wait [#allocation4], 256  }
 0x10a   :  { %432 = vsyncadd [#allocation4], 4294967040 }
 0x10b   :  { %291 = vsyncpa [#allocation4], 1 }

</bundles_post_ra>
